<compile_context>
chip_gen: v5e
topology: v5e:2x2
jax: 0.10.0
libtpu: 0.0.40
codegen_flags: <defaults>
</compile_context>

<pallas_src>
import functools

import jax
import jax.numpy as jnp
from jax.experimental import pallas as pl
from jax.experimental.pallas import tpu as pltpu


QPAD = 128  # lane-dense Q output width (both nets' A columns + zero padding)


# --------------------------------------------------------------------------- #
# Kernel: both networks (critic + target), whole T+1 time loop, Q-head MLP.   #
# --------------------------------------------------------------------------- #
def _dqn_rnn_fused_kernel(T, B, H,
                          a_ref, r_ref, o_ref,
                          wa_ref, ba_ref, wr_ref, br_ref, wo_ref, bo_ref,
                          wia_ref, wirw_ref, wio_ref, bi_ref,
                          wh_ref, bhn_ref,
                          w1_ref, b1_ref, w2_ref, b2_ref, wq_ref, bq_ref,
                          q_ref,
                          gi_ref, hs_ref):
    """Single grid point. H = per-net hidden size; fused width HH = 2H."""
    f32, bf16 = jnp.float32, jnp.bfloat16
    T1 = T + 1
    HH = 2 * H

    def mm(x, w):  # bf16 MXU matmul, f32 accumulation
        return jnp.dot(x.astype(bf16), w.astype(bf16), preferred_element_type=f32)

    # ---- hoisted, time-batched input path (all T+1 steps at once) ------------
    # obs embedder (both nets side by side) + its fused [r|z|n] contribution.
    eo = jnp.maximum(mm(o_ref[...], wo_ref[...]) + bo_ref[...], 0.0)   # ((T+1)B, 2Eo)
    gio = mm(eo, wio_ref[...]) + bi_ref[...]                           # ((T+1)B, 6H)

    # prev-action / prev-reward embedders (valid for t = 1..T).
    ea = jnp.maximum(mm(a_ref[...], wa_ref[...]) + ba_ref[...], 0.0)   # (T*B, 2Ea)
    er = jnp.maximum(r_ref[...] * wr_ref[...] + br_ref[...], 0.0)      # (T*B, 2Er)
    gar = mm(ea, wia_ref[...]) + mm(er, wirw_ref[...])                 # (T*B, 6H)

    # t = 0 uses zero prev-action / prev-reward: relu(0 @ W + b) = relu(b).
    g0 = (mm(jnp.maximum(ba_ref[...], 0.0), wia_ref[...])
          + mm(jnp.maximum(br_ref[...], 0.0), wirw_ref[...]))          # (1, 6H)

    # Stage fused gate pre-activations in a VMEM scratch slab.
    gi_ref[0:B, :] = gio[0:B] + g0
    gi_ref[B:, :] = gio[B:] + gar

    # ---- sequential fused GRU recurrence (torch.nn.GRU cell semantics) -------
    wh = wh_ref[...].astype(bf16)                       # (2H, 6H), loaded once
    bhn = jnp.broadcast_to(bhn_ref[...], (B, HH))       # hoisted b_hn broadcast

    h = jnp.zeros((B, HH), f32)
    for t in range(T1):                                 # static offsets, scratch-staged
        gi = gi_ref[t * B:(t + 1) * B, :]               # (B, 6H)
        gh = jnp.dot(h.astype(bf16), wh, preferred_element_type=f32)
        rz = jax.nn.sigmoid(gi[:, 0:2 * HH] + gh[:, 0:2 * HH])   # r|z, one EUP pass
        rt = rz[:, 0:HH]
        zt = rz[:, HH:2 * HH]
        nt = jnp.tanh(gi[:, 2 * HH:] + rt * (gh[:, 2 * HH:] + bhn))
        h = (1.0 - zt) * nt + zt * h
        hs_ref[t * B:(t + 1) * B, :] = h                # bound live ranges

    # ---- hoisted Q-head MLP on all hidden states of both nets ----------------
    hs = hs_ref[...]
    z1 = jnp.maximum(mm(hs, w1_ref[...]) + b1_ref[...], 0.0)
    z2 = jnp.maximum(mm(z1, w2_ref[...]) + b2_ref[...], 0.0)
    q_ref[...] = mm(z2, wq_ref[...]) + bq_ref[...]      # ((T+1)B, 128) lane-dense


# --------------------------------------------------------------------------- #
# Block-diagonal fusion of the two networks (critic | critic_target).         #
# --------------------------------------------------------------------------- #
def _fuse_gate_weight(w0, w1, H):
    """(in,3H)x2 with cols [r|z|n] -> (2*in, 6H), gate-major [r0 r1|z0 z1|n0 n1]."""
    in_dim = w0.shape[0]
    out = jnp.zeros((2 * in_dim, 6 * H), jnp.float32)
    for g in range(3):
        out = out.at[:in_dim, 2 * g * H:2 * g * H + H].set(w0[:, g * H:(g + 1) * H])
        out = out.at[in_dim:, 2 * g * H + H:2 * (g + 1) * H].set(w1[:, g * H:(g + 1) * H])
    return out


def _fuse_gate_bias(b0, b1, H):
    out = jnp.zeros((1, 6 * H), jnp.float32)
    for g in range(3):
        out = out.at[:, 2 * g * H:2 * g * H + H].set(b0[:, g * H:(g + 1) * H])
        out = out.at[:, 2 * g * H + H:2 * (g + 1) * H].set(b1[:, g * H:(g + 1) * H])
    return out


def _block_diag(w0, w1):
    i0, o0 = w0.shape
    out = jnp.zeros((i0 + w1.shape[0], o0 + w1.shape[1]), jnp.float32)
    return out.at[:i0, :o0].set(w0).at[i0:, o0:].set(w1)


def fuse_networks(p0, p1):
    """Build block-diagonal fused parameters for [critic | critic_target]."""
    H = p0["wh"].shape[0]
    A = p0["wq"].shape[1]
    Q2 = p0["wq"].shape[0]
    cat = lambda a, b: jnp.concatenate([a, b], axis=1)

    # Fold b_hr / b_hz into the input bias (legal: only b_hn must stay inside
    # the r_t * (W_hn h + b_hn) term).
    bi0 = p0["bi"].at[:, :2 * H].add(p0["bh"][:, :2 * H])
    bi1 = p1["bi"].at[:, :2 * H].add(p1["bh"][:, :2 * H])

    wq = jnp.zeros((2 * Q2, QPAD), jnp.float32)
    wq = wq.at[:Q2, :A].set(p0["wq"]).at[Q2:, A:2 * A].set(p1["wq"])
    bq = jnp.zeros((1, QPAD), jnp.float32)
    bq = bq.at[:, :A].set(p0["bq"]).at[:, A:2 * A].set(p1["bq"])

    return {
        "wa": cat(p0["wa"], p1["wa"]), "ba": cat(p0["ba"], p1["ba"]),
        "wr": cat(p0["wr"], p1["wr"]), "br": cat(p0["br"], p1["br"]),
        "wo": cat(p0["wo"], p1["wo"]), "bo": cat(p0["bo"], p1["bo"]),
        "wi_act": _fuse_gate_weight(p0["wi_act"], p1["wi_act"], H),
        "wi_rew": _fuse_gate_weight(p0["wi_rew"], p1["wi_rew"], H),
        "wi_obs": _fuse_gate_weight(p0["wi_obs"], p1["wi_obs"], H),
        "bi": _fuse_gate_bias(bi0, bi1, H),
        "wh": _fuse_gate_weight(p0["wh"], p1["wh"], H),
        "bhn": cat(p0["bh"][:, 2 * H:], p1["bh"][:, 2 * H:]),
        "w1": _block_diag(p0["w1"], p1["w1"]), "b1": cat(p0["b1"], p1["b1"]),
        "w2": _block_diag(p0["w2"], p1["w2"]), "b2": cat(p0["b2"], p1["b2"]),
        "wq": wq, "bq": bq,
    }


PARAM_ORDER = ["wa", "ba", "wr", "br", "wo", "bo",
               "wi_act", "wi_rew", "wi_obs", "bi",
               "wh", "bhn",
               "w1", "b1", "w2", "b2", "wq", "bq"]


def dqn_rnn_q_fused(fused, actions, rewards, observs):
    """One pallas_call computing Q for both nets: returns ((T+1)*B, QPAD)."""
    T, B, action_dim = actions.shape
    T1, _, obs_dim = observs.shape
    H = fused["wh"].shape[0] // 2

    a2 = actions.reshape(T * B, action_dim)
    r2 = rewards.reshape(T * B, 1)
    o2 = observs.reshape(T1 * B, obs_dim)

    def full_spec(arr):
        nd = arr.ndim
        return pl.BlockSpec(arr.shape, lambda n, _nd=nd: (0,) * _nd)

    params = [fused[k] for k in PARAM_ORDER]
    args = [a2, r2, o2] + params

    return pl.pallas_call(
        functools.partial(_dqn_rnn_fused_kernel, T, B, H),
        out_shape=jax.ShapeDtypeStruct((T1 * B, QPAD), jnp.float32),
        grid_spec=pltpu.PrefetchScalarGridSpec(
            num_scalar_prefetch=0,
            grid=(1,),                                   # single fused grid point
            in_specs=[full_spec(x) for x in args],
            out_specs=pl.BlockSpec((T1 * B, QPAD), lambda n: (0, 0)),
            scratch_shapes=[
                pltpu.VMEM((T1 * B, 6 * H), jnp.float32),   # staged gate inputs
                pltpu.VMEM((T1 * B, 2 * H), jnp.float32),   # hidden-state slab
            ],
        ),
        compiler_params=pltpu.CompilerParams(dimension_semantics=("arbitrary",)),
    )(*args)


def dqn_rnn_forward(critic_params, target_params, actions, rewards, observs,
                    terms, masks, gamma):
    """Forward pass of ModelFreeOffPolicy_DQN_RNN (critic loss + mean Q)."""
    T, B, A = actions.shape
    T1 = observs.shape[0]

    fused = fuse_networks(critic_params, target_params)
    q = dqn_rnn_q_fused(fused, actions, rewards, observs)        # ((T+1)B, 128)
    q3 = q.reshape(T1, B, QPAD)
    q_cur = q3[:-1, :, :A]           # critic   Q(h_t, .)        t = 0..T-1
    q_next = q3[1:, :, A:2 * A]      # target   Q(h_{t+1}, .)    t = 0..T-1

    # Tiny DQN loss epilogue in plain jnp (fused by XLA; no extra launch).
    q_pred = jnp.sum(q_cur * actions, axis=-1, keepdims=True)               # (T,B,1)
    q_target = rewards + (1.0 - terms) * gamma * jnp.max(
        q_next, axis=-1, keepdims=True)                                     # (T,B,1)
    q_pred = q_pred * masks
    q_target = q_target * masks
    num_valid = jnp.maximum(jnp.sum(masks), 1.0)   # torch.clamp(masks.sum(), min=1.0)
    qf_loss = jnp.sum((q_pred - q_target) ** 2) / num_valid
    q_mean = jnp.sum(q_pred) / num_valid
    return {"critic_loss": qf_loss, "q": q_mean}


def init_critic_params(key, obs_dim, action_dim, e_obs=32, e_act=16, e_rew=16,
                       hidden=32, q_hidden=(32, 32)):
    """Critic_RNN parameters with fused GRU gate weights (gate order [r|z|n])."""
    h3 = 3 * hidden
    dims = {
        "wa": (action_dim, e_act), "ba": (1, e_act),
        "wr": (1, e_rew), "br": (1, e_rew),
        "wo": (obs_dim, e_obs), "bo": (1, e_obs),
        "wi_act": (e_act, h3), "wi_rew": (e_rew, h3), "wi_obs": (e_obs, h3),
        "bi": (1, h3),
        "wh": (hidden, h3), "bh": (1, h3),
        "w1": (hidden, q_hidden[0]), "b1": (1, q_hidden[0]),
        "w2": (q_hidden[0], q_hidden[1]), "b2": (1, q_hidden[1]),
        "wq": (q_hidden[1], action_dim), "bq": (1, action_dim),
    }
    names = sorted(dims)
    keys = jax.random.split(key, len(names))
    return {n: (0.1 * jax.random.normal(k, dims[n])).astype(jnp.float32)
            for n, k in zip(names, keys)}


if __name__ == "__main__":
    T, B = 8, 8                      # B multiple of 8 (f32 sublane)
    obs_dim, action_dim = 16, 4
    gamma = 0.99

    root = jax.random.PRNGKey(0)
    kp, k1, k2, k3, k4, k5 = jax.random.split(root, 6)

    critic_params = init_critic_params(kp, obs_dim, action_dim)
    # critic_target = deepcopy(critic) at __init__ time -> identical values.
    target_params = jax.tree_util.tree_map(lambda x: x, critic_params)

    act_idx = jax.random.randint(k1, (T, B), 0, action_dim)
    actions = jax.nn.one_hot(act_idx, action_dim, dtype=jnp.float32)       # (T,B,A)
    rewards = jax.random.normal(k2, (T, B, 1), jnp.float32)                # (T,B,1)
    observs = jax.random.normal(k3, (T + 1, B, obs_dim), jnp.float32)      # (T+1,B,obs)
    terms = (jax.random.uniform(k4, (T, B, 1)) < 0.1).astype(jnp.float32)  # (T,B,1)
    masks = (jax.random.uniform(k5, (T, B, 1)) < 0.9).astype(jnp.float32)  # (T,B,1)

    fwd = jax.jit(dqn_rnn_forward)
    outputs = fwd(critic_params, target_params, actions, rewards,
                  observs, terms, masks, gamma)
    outputs = jax.block_until_ready(outputs)
    print("KERNEL_OK")
</pallas_src>

<mosaic_0001>
module attributes {stable_mosaic.version = 11 : i64} {
  func.func @_dqn_rnn_fused_kernel(%arg0: i32, %arg1: memref<64x4xf32, #tpu.memory_space<vmem>>, %arg2: memref<64x1xf32, #tpu.memory_space<vmem>>, %arg3: memref<72x16xf32, #tpu.memory_space<vmem>>, %arg4: memref<4x32xf32, #tpu.memory_space<vmem>>, %arg5: memref<1x32xf32, #tpu.memory_space<vmem>>, %arg6: memref<1x32xf32, #tpu.memory_space<vmem>>, %arg7: memref<1x32xf32, #tpu.memory_space<vmem>>, %arg8: memref<16x64xf32, #tpu.memory_space<vmem>>, %arg9: memref<1x64xf32, #tpu.memory_space<vmem>>, %arg10: memref<32x192xf32, #tpu.memory_space<vmem>>, %arg11: memref<32x192xf32, #tpu.memory_space<vmem>>, %arg12: memref<64x192xf32, #tpu.memory_space<vmem>>, %arg13: memref<1x192xf32, #tpu.memory_space<vmem>>, %arg14: memref<64x192xf32, #tpu.memory_space<vmem>>, %arg15: memref<1x64xf32, #tpu.memory_space<vmem>>, %arg16: memref<64x64xf32, #tpu.memory_space<vmem>>, %arg17: memref<1x64xf32, #tpu.memory_space<vmem>>, %arg18: memref<64x64xf32, #tpu.memory_space<vmem>>, %arg19: memref<1x64xf32, #tpu.memory_space<vmem>>, %arg20: memref<64x128xf32, #tpu.memory_space<vmem>>, %arg21: memref<1x128xf32, #tpu.memory_space<vmem>>, %arg22: memref<72x128xf32, #tpu.memory_space<vmem>>, %arg23: memref<72x192xf32, #tpu.memory_space<vmem>>, %arg24: memref<72x64xf32, #tpu.memory_space<vmem>>) attributes {dimension_semantics = [#tpu.dimension_semantics<arbitrary>], iteration_bounds = array<i64: 1>, scalar_prefetch = 0 : i64, scratch_operands = 2 : i64, tpu.core_type = #tpu.core_type<tc>, window_params = [{pipeline_mode = #tpu.pipeline_mode<synchronous>, transform_indices = @transform_0, window_bounds = array<i64: 64, 4>}, {pipeline_mode = #tpu.pipeline_mode<synchronous>, transform_indices = @transform_1, window_bounds = array<i64: 64, 1>}, {pipeline_mode = #tpu.pipeline_mode<synchronous>, transform_indices = @transform_2, window_bounds = array<i64: 72, 16>}, {pipeline_mode = #tpu.pipeline_mode<synchronous>, transform_indices = @transform_3, window_bounds = array<i64: 4, 32>}, {pipeline_mode = #tpu.pipeline_mode<synchronous>, transform_indices = @transform_4, window_bounds = array<i64: 1, 32>}, {pipeline_mode = #tpu.pipeline_mode<synchronous>, transform_indices = @transform_5, window_bounds = array<i64: 1, 32>}, {pipeline_mode = #tpu.pipeline_mode<synchronous>, transform_indices = @transform_6, window_bounds = array<i64: 1, 32>}, {pipeline_mode = #tpu.pipeline_mode<synchronous>, transform_indices = @transform_7, window_bounds = array<i64: 16, 64>}, {pipeline_mode = #tpu.pipeline_mode<synchronous>, transform_indices = @transform_8, window_bounds = array<i64: 1, 64>}, {pipeline_mode = #tpu.pipeline_mode<synchronous>, transform_indices = @transform_9, window_bounds = array<i64: 32, 192>}, {pipeline_mode = #tpu.pipeline_mode<synchronous>, transform_indices = @transform_10, window_bounds = array<i64: 32, 192>}, {pipeline_mode = #tpu.pipeline_mode<synchronous>, transform_indices = @transform_11, window_bounds = array<i64: 64, 192>}, {pipeline_mode = #tpu.pipeline_mode<synchronous>, transform_indices = @transform_12, window_bounds = array<i64: 1, 192>}, {pipeline_mode = #tpu.pipeline_mode<synchronous>, transform_indices = @transform_13, window_bounds = array<i64: 64, 192>}, {pipeline_mode = #tpu.pipeline_mode<synchronous>, transform_indices = @transform_14, window_bounds = array<i64: 1, 64>}, {pipeline_mode = #tpu.pipeline_mode<synchronous>, transform_indices = @transform_15, window_bounds = array<i64: 64, 64>}, {pipeline_mode = #tpu.pipeline_mode<synchronous>, transform_indices = @transform_16, window_bounds = array<i64: 1, 64>}, {pipeline_mode = #tpu.pipeline_mode<synchronous>, transform_indices = @transform_17, window_bounds = array<i64: 64, 64>}, {pipeline_mode = #tpu.pipeline_mode<synchronous>, transform_indices = @transform_18, window_bounds = array<i64: 1, 64>}, {pipeline_mode = #tpu.pipeline_mode<synchronous>, transform_indices = @transform_19, window_bounds = array<i64: 64, 128>}, {pipeline_mode = #tpu.pipeline_mode<synchronous>, transform_indices = @transform_20, window_bounds = array<i64: 1, 128>}, {pipeline_mode = #tpu.pipeline_mode<synchronous>, transform_indices = @transform_21, window_bounds = array<i64: 72, 128>}]} {
    %c0 = arith.constant 0 : index
    %c0_0 = arith.constant 0 : index
    %0 = vector.load %arg3[%c0, %c0_0] : memref<72x16xf32, #tpu.memory_space<vmem>>, vector<72x16xf32>
    %c0_1 = arith.constant 0 : index
    %c0_2 = arith.constant 0 : index
    %1 = vector.load %arg8[%c0_1, %c0_2] : memref<16x64xf32, #tpu.memory_space<vmem>>, vector<16x64xf32>
    %2 = arith.truncf %0 : vector<72x16xf32> to vector<72x16xbf16>
    %3 = arith.truncf %1 : vector<16x64xf32> to vector<16x64xbf16>
    %cst = arith.constant dense<0.000000e+00> : vector<72x64xf32>
    %4 = tpu.matmul %2, %3, %cst {dimension_numbers = #tpu.dot_dimension_numbers<[1], [0], [0], [1], [0, 0, 1, 1], [], []>} : vector<72x16xbf16>, vector<16x64xbf16>, vector<72x64xf32> -> vector<72x64xf32>
    %c0_3 = arith.constant 0 : index
    %c0_4 = arith.constant 0 : index
    %5 = vector.load %arg9[%c0_3, %c0_4] : memref<1x64xf32, #tpu.memory_space<vmem>>, vector<1x64xf32>
    %6 = vector.broadcast %5 : vector<1x64xf32> to vector<72x64xf32>
    %7 = arith.addf %4, %6 : vector<72x64xf32>
    %cst_5 = arith.constant 0.000000e+00 : f32
    %8 = vector.broadcast %cst_5 : f32 to vector<72x64xf32>
    %9 = arith.maximumf %7, %8 : vector<72x64xf32>
    %c0_6 = arith.constant 0 : index
    %c0_7 = arith.constant 0 : index
    %10 = vector.load %arg12[%c0_6, %c0_7] : memref<64x192xf32, #tpu.memory_space<vmem>>, vector<64x192xf32>
    %11 = arith.truncf %9 : vector<72x64xf32> to vector<72x64xbf16>
    %12 = arith.truncf %10 : vector<64x192xf32> to vector<64x192xbf16>
    %cst_8 = arith.constant dense<0.000000e+00> : vector<72x192xf32>
    %13 = tpu.matmul %11, %12, %cst_8 {dimension_numbers = #tpu.dot_dimension_numbers<[1], [0], [0], [1], [0, 0, 1, 1], [], []>} : vector<72x64xbf16>, vector<64x192xbf16>, vector<72x192xf32> -> vector<72x192xf32>
    %c0_9 = arith.constant 0 : index
    %c0_10 = arith.constant 0 : index
    %14 = vector.load %arg13[%c0_9, %c0_10] : memref<1x192xf32, #tpu.memory_space<vmem>>, vector<1x192xf32>
    %15 = vector.broadcast %14 : vector<1x192xf32> to vector<72x192xf32>
    %16 = arith.addf %13, %15 : vector<72x192xf32>
    %c0_11 = arith.constant 0 : index
    %c0_12 = arith.constant 0 : index
    %17 = vector.load %arg1[%c0_11, %c0_12] : memref<64x4xf32, #tpu.memory_space<vmem>>, vector<64x4xf32>
    %c0_13 = arith.constant 0 : index
    %c0_14 = arith.constant 0 : index
    %18 = vector.load %arg4[%c0_13, %c0_14] : memref<4x32xf32, #tpu.memory_space<vmem>>, vector<4x32xf32>
    %19 = arith.truncf %17 : vector<64x4xf32> to vector<64x4xbf16>
    %20 = arith.truncf %18 : vector<4x32xf32> to vector<4x32xbf16>
    %cst_15 = arith.constant dense<0.000000e+00> : vector<64x32xf32>
    %21 = tpu.matmul %19, %20, %cst_15 {dimension_numbers = #tpu.dot_dimension_numbers<[1], [0], [0], [1], [0, 0, 1, 1], [], []>} : vector<64x4xbf16>, vector<4x32xbf16>, vector<64x32xf32> -> vector<64x32xf32>
    %c0_16 = arith.constant 0 : index
    %c0_17 = arith.constant 0 : index
    %22 = vector.load %arg5[%c0_16, %c0_17] : memref<1x32xf32, #tpu.memory_space<vmem>>, vector<1x32xf32>
    %23 = vector.broadcast %22 : vector<1x32xf32> to vector<64x32xf32>
    %24 = arith.addf %21, %23 : vector<64x32xf32>
    %cst_18 = arith.constant 0.000000e+00 : f32
    %25 = vector.broadcast %cst_18 : f32 to vector<64x32xf32>
    %26 = arith.maximumf %24, %25 : vector<64x32xf32>
    %c0_19 = arith.constant 0 : index
    %c0_20 = arith.constant 0 : index
    %27 = vector.load %arg2[%c0_19, %c0_20] : memref<64x1xf32, #tpu.memory_space<vmem>>, vector<64x1xf32>
    %c0_21 = arith.constant 0 : index
    %c0_22 = arith.constant 0 : index
    %28 = vector.load %arg6[%c0_21, %c0_22] : memref<1x32xf32, #tpu.memory_space<vmem>>, vector<1x32xf32>
    %29 = vector.broadcast %27 : vector<64x1xf32> to vector<64x32xf32>
    %30 = vector.broadcast %28 : vector<1x32xf32> to vector<64x32xf32>
    %31 = arith.mulf %29, %30 : vector<64x32xf32>
    %c0_23 = arith.constant 0 : index
    %c0_24 = arith.constant 0 : index
    %32 = vector.load %arg7[%c0_23, %c0_24] : memref<1x32xf32, #tpu.memory_space<vmem>>, vector<1x32xf32>
    %33 = vector.broadcast %32 : vector<1x32xf32> to vector<64x32xf32>
    %34 = arith.addf %31, %33 : vector<64x32xf32>
    %cst_25 = arith.constant 0.000000e+00 : f32
    %35 = vector.broadcast %cst_25 : f32 to vector<64x32xf32>
    %36 = arith.maximumf %34, %35 : vector<64x32xf32>
    %c0_26 = arith.constant 0 : index
    %c0_27 = arith.constant 0 : index
    %37 = vector.load %arg10[%c0_26, %c0_27] : memref<32x192xf32, #tpu.memory_space<vmem>>, vector<32x192xf32>
    %38 = arith.truncf %26 : vector<64x32xf32> to vector<64x32xbf16>
    %39 = arith.truncf %37 : vector<32x192xf32> to vector<32x192xbf16>
    %cst_28 = arith.constant dense<0.000000e+00> : vector<64x192xf32>
    %40 = tpu.matmul %38, %39, %cst_28 {dimension_numbers = #tpu.dot_dimension_numbers<[1], [0], [0], [1], [0, 0, 1, 1], [], []>} : vector<64x32xbf16>, vector<32x192xbf16>, vector<64x192xf32> -> vector<64x192xf32>
    %c0_29 = arith.constant 0 : index
    %c0_30 = arith.constant 0 : index
    %41 = vector.load %arg11[%c0_29, %c0_30] : memref<32x192xf32, #tpu.memory_space<vmem>>, vector<32x192xf32>
    %42 = arith.truncf %36 : vector<64x32xf32> to vector<64x32xbf16>
    %43 = arith.truncf %41 : vector<32x192xf32> to vector<32x192xbf16>
    %cst_31 = arith.constant dense<0.000000e+00> : vector<64x192xf32>
    %44 = tpu.matmul %42, %43, %cst_31 {dimension_numbers = #tpu.dot_dimension_numbers<[1], [0], [0], [1], [0, 0, 1, 1], [], []>} : vector<64x32xbf16>, vector<32x192xbf16>, vector<64x192xf32> -> vector<64x192xf32>
    %45 = arith.addf %40, %44 : vector<64x192xf32>
    %c0_32 = arith.constant 0 : index
    %c0_33 = arith.constant 0 : index
    %46 = vector.load %arg5[%c0_32, %c0_33] : memref<1x32xf32, #tpu.memory_space<vmem>>, vector<1x32xf32>
    %cst_34 = arith.constant 0.000000e+00 : f32
    %47 = vector.broadcast %cst_34 : f32 to vector<1x32xf32>
    %48 = arith.maximumf %46, %47 : vector<1x32xf32>
    %c0_35 = arith.constant 0 : index
    %c0_36 = arith.constant 0 : index
    %49 = vector.load %arg10[%c0_35, %c0_36] : memref<32x192xf32, #tpu.memory_space<vmem>>, vector<32x192xf32>
    %50 = arith.truncf %48 : vector<1x32xf32> to vector<1x32xbf16>
    %51 = arith.truncf %49 : vector<32x192xf32> to vector<32x192xbf16>
    %cst_37 = arith.constant dense<0.000000e+00> : vector<1x192xf32>
    %52 = tpu.matmul %50, %51, %cst_37 {dimension_numbers = #tpu.dot_dimension_numbers<[1], [0], [0], [1], [0, 0, 1, 1], [], []>} : vector<1x32xbf16>, vector<32x192xbf16>, vector<1x192xf32> -> vector<1x192xf32>
    %c0_38 = arith.constant 0 : index
    %c0_39 = arith.constant 0 : index
    %53 = vector.load %arg7[%c0_38, %c0_39] : memref<1x32xf32, #tpu.memory_space<vmem>>, vector<1x32xf32>
    %cst_40 = arith.constant 0.000000e+00 : f32
    %54 = vector.broadcast %cst_40 : f32 to vector<1x32xf32>
    %55 = arith.maximumf %53, %54 : vector<1x32xf32>
    %c0_41 = arith.constant 0 : index
    %c0_42 = arith.constant 0 : index
    %56 = vector.load %arg11[%c0_41, %c0_42] : memref<32x192xf32, #tpu.memory_space<vmem>>, vector<32x192xf32>
    %57 = arith.truncf %55 : vector<1x32xf32> to vector<1x32xbf16>
    %58 = arith.truncf %56 : vector<32x192xf32> to vector<32x192xbf16>
    %cst_43 = arith.constant dense<0.000000e+00> : vector<1x192xf32>
    %59 = tpu.matmul %57, %58, %cst_43 {dimension_numbers = #tpu.dot_dimension_numbers<[1], [0], [0], [1], [0, 0, 1, 1], [], []>} : vector<1x32xbf16>, vector<32x192xbf16>, vector<1x192xf32> -> vector<1x192xf32>
    %60 = arith.addf %52, %59 : vector<1x192xf32>
    %61 = vector.extract_strided_slice %16 {offsets = [0, 0], sizes = [8, 192], strides = [1, 1]} : vector<72x192xf32> to vector<8x192xf32>
    %62 = vector.broadcast %60 : vector<1x192xf32> to vector<8x192xf32>
    %63 = arith.addf %61, %62 : vector<8x192xf32>
    %c0_44 = arith.constant 0 : index
    %c0_45 = arith.constant 0 : index
    %64 = vector.load %arg23[%c0_44, %c0_45] : memref<72x192xf32, #tpu.memory_space<vmem>>, vector<8x192xf32>
    tpu.vector_store %arg23[%c0_44, %c0_45], %63 {strides = array<i32>} : memref<72x192xf32, #tpu.memory_space<vmem>>, vector<8x192xf32>,
    %65 = vector.extract_strided_slice %16 {offsets = [8, 0], sizes = [64, 192], strides = [1, 1]} : vector<72x192xf32> to vector<64x192xf32>
    %66 = arith.addf %65, %45 : vector<64x192xf32>
    %c8 = arith.constant 8 : index
    %c0_46 = arith.constant 0 : index
    %67 = vector.load %arg23[%c8, %c0_46] : memref<72x192xf32, #tpu.memory_space<vmem>>, vector<64x192xf32>
    tpu.vector_store %arg23[%c8, %c0_46], %66 {strides = array<i32>} : memref<72x192xf32, #tpu.memory_space<vmem>>, vector<64x192xf32>,
    %c0_47 = arith.constant 0 : index
    %c0_48 = arith.constant 0 : index
    %68 = vector.load %arg14[%c0_47, %c0_48] : memref<64x192xf32, #tpu.memory_space<vmem>>, vector<64x192xf32>
    %69 = arith.truncf %68 : vector<64x192xf32> to vector<64x192xbf16>
    %c0_49 = arith.constant 0 : index
    %c0_50 = arith.constant 0 : index
    %70 = vector.load %arg15[%c0_49, %c0_50] : memref<1x64xf32, #tpu.memory_space<vmem>>, vector<1x64xf32>
    %71 = vector.shape_cast %70 : vector<1x64xf32> to vector<1x64xf32>
    %72 = vector.broadcast %71 : vector<1x64xf32> to vector<8x64xf32>
    %cst_51 = arith.constant 0.000000e+00 : f32
    %73 = vector.broadcast %cst_51 : f32 to vector<8x64xf32>
    %c0_52 = arith.constant 0 : index
    %c0_53 = arith.constant 0 : index
    %74 = vector.load %arg23[%c0_52, %c0_53] : memref<72x192xf32, #tpu.memory_space<vmem>>, vector<8x192xf32>
    %75 = arith.truncf %73 : vector<8x64xf32> to vector<8x64xbf16>
    %cst_54 = arith.constant dense<0.000000e+00> : vector<8x192xf32>
    %76 = tpu.matmul %75, %69, %cst_54 {dimension_numbers = #tpu.dot_dimension_numbers<[1], [0], [0], [1], [0, 0, 1, 1], [], []>} : vector<8x64xbf16>, vector<64x192xbf16>, vector<8x192xf32> -> vector<8x192xf32>
    %77 = vector.extract_strided_slice %74 {offsets = [0, 0], sizes = [8, 128], strides = [1, 1]} : vector<8x192xf32> to vector<8x128xf32>
    %78 = vector.extract_strided_slice %76 {offsets = [0, 0], sizes = [8, 128], strides = [1, 1]} : vector<8x192xf32> to vector<8x128xf32>
    %79 = arith.addf %77, %78 : vector<8x128xf32>
    %80 = arith.negf %79 : vector<8x128xf32>
    %81 = math.exp %80 : vector<8x128xf32>
    %cst_55 = arith.constant 1.000000e+00 : f32
    %82 = vector.broadcast %cst_55 : f32 to vector<8x128xf32>
    %83 = arith.addf %82, %81 : vector<8x128xf32>
    %84 = arith.divf %82, %83 : vector<8x128xf32>
    %85 = vector.extract_strided_slice %84 {offsets = [0, 0], sizes = [8, 64], strides = [1, 1]} : vector<8x128xf32> to vector<8x64xf32>
    %86 = vector.extract_strided_slice %84 {offsets = [0, 64], sizes = [8, 64], strides = [1, 1]} : vector<8x128xf32> to vector<8x64xf32>
    %87 = vector.extract_strided_slice %74 {offsets = [0, 128], sizes = [8, 64], strides = [1, 1]} : vector<8x192xf32> to vector<8x64xf32>
    %88 = vector.extract_strided_slice %76 {offsets = [0, 128], sizes = [8, 64], strides = [1, 1]} : vector<8x192xf32> to vector<8x64xf32>
    %89 = arith.addf %88, %72 : vector<8x64xf32>
    %90 = arith.mulf %85, %89 : vector<8x64xf32>
    %91 = arith.addf %87, %90 : vector<8x64xf32>
    %92 = math.tanh %91 : vector<8x64xf32>
    %cst_56 = arith.constant 1.000000e+00 : f32
    %93 = vector.broadcast %cst_56 : f32 to vector<8x64xf32>
    %94 = arith.subf %93, %86 : vector<8x64xf32>
    %95 = arith.mulf %94, %92 : vector<8x64xf32>
    %96 = arith.mulf %86, %73 : vector<8x64xf32>
    %97 = arith.addf %95, %96 : vector<8x64xf32>
    %c0_57 = arith.constant 0 : index
    %c0_58 = arith.constant 0 : index
    %98 = vector.load %arg24[%c0_57, %c0_58] : memref<72x64xf32, #tpu.memory_space<vmem>>, vector<8x64xf32>
    tpu.vector_store %arg24[%c0_57, %c0_58], %97 {strides = array<i32>} : memref<72x64xf32, #tpu.memory_space<vmem>>, vector<8x64xf32>,
    %c8_59 = arith.constant 8 : index
    %c0_60 = arith.constant 0 : index
    %99 = vector.load %arg23[%c8_59, %c0_60] : memref<72x192xf32, #tpu.memory_space<vmem>>, vector<8x192xf32>
    %100 = arith.truncf %97 : vector<8x64xf32> to vector<8x64xbf16>
    %cst_61 = arith.constant dense<0.000000e+00> : vector<8x192xf32>
    %101 = tpu.matmul %100, %69, %cst_61 {dimension_numbers = #tpu.dot_dimension_numbers<[1], [0], [0], [1], [0, 0, 1, 1], [], []>} : vector<8x64xbf16>, vector<64x192xbf16>, vector<8x192xf32> -> vector<8x192xf32>
    %102 = vector.extract_strided_slice %99 {offsets = [0, 0], sizes = [8, 128], strides = [1, 1]} : vector<8x192xf32> to vector<8x128xf32>
    %103 = vector.extract_strided_slice %101 {offsets = [0, 0], sizes = [8, 128], strides = [1, 1]} : vector<8x192xf32> to vector<8x128xf32>
    %104 = arith.addf %102, %103 : vector<8x128xf32>
    %105 = arith.negf %104 : vector<8x128xf32>
    %106 = math.exp %105 : vector<8x128xf32>
    %cst_62 = arith.constant 1.000000e+00 : f32
    %107 = vector.broadcast %cst_62 : f32 to vector<8x128xf32>
    %108 = arith.addf %107, %106 : vector<8x128xf32>
    %109 = arith.divf %107, %108 : vector<8x128xf32>
    %110 = vector.extract_strided_slice %109 {offsets = [0, 0], sizes = [8, 64], strides = [1, 1]} : vector<8x128xf32> to vector<8x64xf32>
    %111 = vector.extract_strided_slice %109 {offsets = [0, 64], sizes = [8, 64], strides = [1, 1]} : vector<8x128xf32> to vector<8x64xf32>
    %112 = vector.extract_strided_slice %99 {offsets = [0, 128], sizes = [8, 64], strides = [1, 1]} : vector<8x192xf32> to vector<8x64xf32>
    %113 = vector.extract_strided_slice %101 {offsets = [0, 128], sizes = [8, 64], strides = [1, 1]} : vector<8x192xf32> to vector<8x64xf32>
    %114 = arith.addf %113, %72 : vector<8x64xf32>
    %115 = arith.mulf %110, %114 : vector<8x64xf32>
    %116 = arith.addf %112, %115 : vector<8x64xf32>
    %117 = math.tanh %116 : vector<8x64xf32>
    %cst_63 = arith.constant 1.000000e+00 : f32
    %118 = vector.broadcast %cst_63 : f32 to vector<8x64xf32>
    %119 = arith.subf %118, %111 : vector<8x64xf32>
    %120 = arith.mulf %119, %117 : vector<8x64xf32>
    %121 = arith.mulf %111, %97 : vector<8x64xf32>
    %122 = arith.addf %120, %121 : vector<8x64xf32>
    %c8_64 = arith.constant 8 : index
    %c0_65 = arith.constant 0 : index
    %123 = vector.load %arg24[%c8_64, %c0_65] : memref<72x64xf32, #tpu.memory_space<vmem>>, vector<8x64xf32>
    tpu.vector_store %arg24[%c8_64, %c0_65], %122 {strides = array<i32>} : memref<72x64xf32, #tpu.memory_space<vmem>>, vector<8x64xf32>,
    %c16 = arith.constant 16 : index
    %c0_66 = arith.constant 0 : index
    %124 = vector.load %arg23[%c16, %c0_66] : memref<72x192xf32, #tpu.memory_space<vmem>>, vector<8x192xf32>
    %125 = arith.truncf %122 : vector<8x64xf32> to vector<8x64xbf16>
    %cst_67 = arith.constant dense<0.000000e+00> : vector<8x192xf32>
    %126 = tpu.matmul %125, %69, %cst_67 {dimension_numbers = #tpu.dot_dimension_numbers<[1], [0], [0], [1], [0, 0, 1, 1], [], []>} : vector<8x64xbf16>, vector<64x192xbf16>, vector<8x192xf32> -> vector<8x192xf32>
    %127 = vector.extract_strided_slice %124 {offsets = [0, 0], sizes = [8, 128], strides = [1, 1]} : vector<8x192xf32> to vector<8x128xf32>
    %128 = vector.extract_strided_slice %126 {offsets = [0, 0], sizes = [8, 128], strides = [1, 1]} : vector<8x192xf32> to vector<8x128xf32>
    %129 = arith.addf %127, %128 : vector<8x128xf32>
    %130 = arith.negf %129 : vector<8x128xf32>
    %131 = math.exp %130 : vector<8x128xf32>
    %cst_68 = arith.constant 1.000000e+00 : f32
    %132 = vector.broadcast %cst_68 : f32 to vector<8x128xf32>
    %133 = arith.addf %132, %131 : vector<8x128xf32>
    %134 = arith.divf %132, %133 : vector<8x128xf32>
    %135 = vector.extract_strided_slice %134 {offsets = [0, 0], sizes = [8, 64], strides = [1, 1]} : vector<8x128xf32> to vector<8x64xf32>
    %136 = vector.extract_strided_slice %134 {offsets = [0, 64], sizes = [8, 64], strides = [1, 1]} : vector<8x128xf32> to vector<8x64xf32>
    %137 = vector.extract_strided_slice %124 {offsets = [0, 128], sizes = [8, 64], strides = [1, 1]} : vector<8x192xf32> to vector<8x64xf32>
    %138 = vector.extract_strided_slice %126 {offsets = [0, 128], sizes = [8, 64], strides = [1, 1]} : vector<8x192xf32> to vector<8x64xf32>
    %139 = arith.addf %138, %72 : vector<8x64xf32>
    %140 = arith.mulf %135, %139 : vector<8x64xf32>
    %141 = arith.addf %137, %140 : vector<8x64xf32>
    %142 = math.tanh %141 : vector<8x64xf32>
    %cst_69 = arith.constant 1.000000e+00 : f32
    %143 = vector.broadcast %cst_69 : f32 to vector<8x64xf32>
    %144 = arith.subf %143, %136 : vector<8x64xf32>
    %145 = arith.mulf %144, %142 : vector<8x64xf32>
    %146 = arith.mulf %136, %122 : vector<8x64xf32>
    %147 = arith.addf %145, %146 : vector<8x64xf32>
    %c16_70 = arith.constant 16 : index
    %c0_71 = arith.constant 0 : index
    %148 = vector.load %arg24[%c16_70, %c0_71] : memref<72x64xf32, #tpu.memory_space<vmem>>, vector<8x64xf32>
    tpu.vector_store %arg24[%c16_70, %c0_71], %147 {strides = array<i32>} : memref<72x64xf32, #tpu.memory_space<vmem>>, vector<8x64xf32>,
    %c24 = arith.constant 24 : index
    %c0_72 = arith.constant 0 : index
    %149 = vector.load %arg23[%c24, %c0_72] : memref<72x192xf32, #tpu.memory_space<vmem>>, vector<8x192xf32>
    %150 = arith.truncf %147 : vector<8x64xf32> to vector<8x64xbf16>
    %cst_73 = arith.constant dense<0.000000e+00> : vector<8x192xf32>
    %151 = tpu.matmul %150, %69, %cst_73 {dimension_numbers = #tpu.dot_dimension_numbers<[1], [0], [0], [1], [0, 0, 1, 1], [], []>} : vector<8x64xbf16>, vector<64x192xbf16>, vector<8x192xf32> -> vector<8x192xf32>
    %152 = vector.extract_strided_slice %149 {offsets = [0, 0], sizes = [8, 128], strides = [1, 1]} : vector<8x192xf32> to vector<8x128xf32>
    %153 = vector.extract_strided_slice %151 {offsets = [0, 0], sizes = [8, 128], strides = [1, 1]} : vector<8x192xf32> to vector<8x128xf32>
    %154 = arith.addf %152, %153 : vector<8x128xf32>
    %155 = arith.negf %154 : vector<8x128xf32>
    %156 = math.exp %155 : vector<8x128xf32>
    %cst_74 = arith.constant 1.000000e+00 : f32
    %157 = vector.broadcast %cst_74 : f32 to vector<8x128xf32>
    %158 = arith.addf %157, %156 : vector<8x128xf32>
    %159 = arith.divf %157, %158 : vector<8x128xf32>
    %160 = vector.extract_strided_slice %159 {offsets = [0, 0], sizes = [8, 64], strides = [1, 1]} : vector<8x128xf32> to vector<8x64xf32>
    %161 = vector.extract_strided_slice %159 {offsets = [0, 64], sizes = [8, 64], strides = [1, 1]} : vector<8x128xf32> to vector<8x64xf32>
    %162 = vector.extract_strided_slice %149 {offsets = [0, 128], sizes = [8, 64], strides = [1, 1]} : vector<8x192xf32> to vector<8x64xf32>
    %163 = vector.extract_strided_slice %151 {offsets = [0, 128], sizes = [8, 64], strides = [1, 1]} : vector<8x192xf32> to vector<8x64xf32>
    %164 = arith.addf %163, %72 : vector<8x64xf32>
    %165 = arith.mulf %160, %164 : vector<8x64xf32>
    %166 = arith.addf %162, %165 : vector<8x64xf32>
    %167 = math.tanh %166 : vector<8x64xf32>
    %cst_75 = arith.constant 1.000000e+00 : f32
    %168 = vector.broadcast %cst_75 : f32 to vector<8x64xf32>
    %169 = arith.subf %168, %161 : vector<8x64xf32>
    %170 = arith.mulf %169, %167 : vector<8x64xf32>
    %171 = arith.mulf %161, %147 : vector<8x64xf32>
    %172 = arith.addf %170, %171 : vector<8x64xf32>
    %c24_76 = arith.constant 24 : index
    %c0_77 = arith.constant 0 : index
    %173 = vector.load %arg24[%c24_76, %c0_77] : memref<72x64xf32, #tpu.memory_space<vmem>>, vector<8x64xf32>
    tpu.vector_store %arg24[%c24_76, %c0_77], %172 {strides = array<i32>} : memref<72x64xf32, #tpu.memory_space<vmem>>, vector<8x64xf32>,
    %c32 = arith.constant 32 : index
    %c0_78 = arith.constant 0 : index
    %174 = vector.load %arg23[%c32, %c0_78] : memref<72x192xf32, #tpu.memory_space<vmem>>, vector<8x192xf32>
    %175 = arith.truncf %172 : vector<8x64xf32> to vector<8x64xbf16>
    %cst_79 = arith.constant dense<0.000000e+00> : vector<8x192xf32>
    %176 = tpu.matmul %175, %69, %cst_79 {dimension_numbers = #tpu.dot_dimension_numbers<[1], [0], [0], [1], [0, 0, 1, 1], [], []>} : vector<8x64xbf16>, vector<64x192xbf16>, vector<8x192xf32> -> vector<8x192xf32>
    %177 = vector.extract_strided_slice %174 {offsets = [0, 0], sizes = [8, 128], strides = [1, 1]} : vector<8x192xf32> to vector<8x128xf32>
    %178 = vector.extract_strided_slice %176 {offsets = [0, 0], sizes = [8, 128], strides = [1, 1]} : vector<8x192xf32> to vector<8x128xf32>
    %179 = arith.addf %177, %178 : vector<8x128xf32>
    %180 = arith.negf %179 : vector<8x128xf32>
    %181 = math.exp %180 : vector<8x128xf32>
    %cst_80 = arith.constant 1.000000e+00 : f32
    %182 = vector.broadcast %cst_80 : f32 to vector<8x128xf32>
    %183 = arith.addf %182, %181 : vector<8x128xf32>
    %184 = arith.divf %182, %183 : vector<8x128xf32>
    %185 = vector.extract_strided_slice %184 {offsets = [0, 0], sizes = [8, 64], strides = [1, 1]} : vector<8x128xf32> to vector<8x64xf32>
    %186 = vector.extract_strided_slice %184 {offsets = [0, 64], sizes = [8, 64], strides = [1, 1]} : vector<8x128xf32> to vector<8x64xf32>
    %187 = vector.extract_strided_slice %174 {offsets = [0, 128], sizes = [8, 64], strides = [1, 1]} : vector<8x192xf32> to vector<8x64xf32>
    %188 = vector.extract_strided_slice %176 {offsets = [0, 128], sizes = [8, 64], strides = [1, 1]} : vector<8x192xf32> to vector<8x64xf32>
    %189 = arith.addf %188, %72 : vector<8x64xf32>
    %190 = arith.mulf %185, %189 : vector<8x64xf32>
    %191 = arith.addf %187, %190 : vector<8x64xf32>
    %192 = math.tanh %191 : vector<8x64xf32>
    %cst_81 = arith.constant 1.000000e+00 : f32
    %193 = vector.broadcast %cst_81 : f32 to vector<8x64xf32>
    %194 = arith.subf %193, %186 : vector<8x64xf32>
    %195 = arith.mulf %194, %192 : vector<8x64xf32>
    %196 = arith.mulf %186, %172 : vector<8x64xf32>
    %197 = arith.addf %195, %196 : vector<8x64xf32>
    %c32_82 = arith.constant 32 : index
    %c0_83 = arith.constant 0 : index
    %198 = vector.load %arg24[%c32_82, %c0_83] : memref<72x64xf32, #tpu.memory_space<vmem>>, vector<8x64xf32>
    tpu.vector_store %arg24[%c32_82, %c0_83], %197 {strides = array<i32>} : memref<72x64xf32, #tpu.memory_space<vmem>>, vector<8x64xf32>,
    %c40 = arith.constant 40 : index
    %c0_84 = arith.constant 0 : index
    %199 = vector.load %arg23[%c40, %c0_84] : memref<72x192xf32, #tpu.memory_space<vmem>>, vector<8x192xf32>
    %200 = arith.truncf %197 : vector<8x64xf32> to vector<8x64xbf16>
    %cst_85 = arith.constant dense<0.000000e+00> : vector<8x192xf32>
    %201 = tpu.matmul %200, %69, %cst_85 {dimension_numbers = #tpu.dot_dimension_numbers<[1], [0], [0], [1], [0, 0, 1, 1], [], []>} : vector<8x64xbf16>, vector<64x192xbf16>, vector<8x192xf32> -> vector<8x192xf32>
    %202 = vector.extract_strided_slice %199 {offsets = [0, 0], sizes = [8, 128], strides = [1, 1]} : vector<8x192xf32> to vector<8x128xf32>
    %203 = vector.extract_strided_slice %201 {offsets = [0, 0], sizes = [8, 128], strides = [1, 1]} : vector<8x192xf32> to vector<8x128xf32>
    %204 = arith.addf %202, %203 : vector<8x128xf32>
    %205 = arith.negf %204 : vector<8x128xf32>
    %206 = math.exp %205 : vector<8x128xf32>
    %cst_86 = arith.constant 1.000000e+00 : f32
    %207 = vector.broadcast %cst_86 : f32 to vector<8x128xf32>
    %208 = arith.addf %207, %206 : vector<8x128xf32>
    %209 = arith.divf %207, %208 : vector<8x128xf32>
    %210 = vector.extract_strided_slice %209 {offsets = [0, 0], sizes = [8, 64], strides = [1, 1]} : vector<8x128xf32> to vector<8x64xf32>
    %211 = vector.extract_strided_slice %209 {offsets = [0, 64], sizes = [8, 64], strides = [1, 1]} : vector<8x128xf32> to vector<8x64xf32>
    %212 = vector.extract_strided_slice %199 {offsets = [0, 128], sizes = [8, 64], strides = [1, 1]} : vector<8x192xf32> to vector<8x64xf32>
    %213 = vector.extract_strided_slice %201 {offsets = [0, 128], sizes = [8, 64], strides = [1, 1]} : vector<8x192xf32> to vector<8x64xf32>
    %214 = arith.addf %213, %72 : vector<8x64xf32>
    %215 = arith.mulf %210, %214 : vector<8x64xf32>
    %216 = arith.addf %212, %215 : vector<8x64xf32>
    %217 = math.tanh %216 : vector<8x64xf32>
    %cst_87 = arith.constant 1.000000e+00 : f32
    %218 = vector.broadcast %cst_87 : f32 to vector<8x64xf32>
    %219 = arith.subf %218, %211 : vector<8x64xf32>
    %220 = arith.mulf %219, %217 : vector<8x64xf32>
    %221 = arith.mulf %211, %197 : vector<8x64xf32>
    %222 = arith.addf %220, %221 : vector<8x64xf32>
    %c40_88 = arith.constant 40 : index
    %c0_89 = arith.constant 0 : index
    %223 = vector.load %arg24[%c40_88, %c0_89] : memref<72x64xf32, #tpu.memory_space<vmem>>, vector<8x64xf32>
    tpu.vector_store %arg24[%c40_88, %c0_89], %222 {strides = array<i32>} : memref<72x64xf32, #tpu.memory_space<vmem>>, vector<8x64xf32>,
    %c48 = arith.constant 48 : index
    %c0_90 = arith.constant 0 : index
    %224 = vector.load %arg23[%c48, %c0_90] : memref<72x192xf32, #tpu.memory_space<vmem>>, vector<8x192xf32>
    %225 = arith.truncf %222 : vector<8x64xf32> to vector<8x64xbf16>
    %cst_91 = arith.constant dense<0.000000e+00> : vector<8x192xf32>
    %226 = tpu.matmul %225, %69, %cst_91 {dimension_numbers = #tpu.dot_dimension_numbers<[1], [0], [0], [1], [0, 0, 1, 1], [], []>} : vector<8x64xbf16>, vector<64x192xbf16>, vector<8x192xf32> -> vector<8x192xf32>
    %227 = vector.extract_strided_slice %224 {offsets = [0, 0], sizes = [8, 128], strides = [1, 1]} : vector<8x192xf32> to vector<8x128xf32>
    %228 = vector.extract_strided_slice %226 {offsets = [0, 0], sizes = [8, 128], strides = [1, 1]} : vector<8x192xf32> to vector<8x128xf32>
    %229 = arith.addf %227, %228 : vector<8x128xf32>
    %230 = arith.negf %229 : vector<8x128xf32>
    %231 = math.exp %230 : vector<8x128xf32>
    %cst_92 = arith.constant 1.000000e+00 : f32
    %232 = vector.broadcast %cst_92 : f32 to vector<8x128xf32>
    %233 = arith.addf %232, %231 : vector<8x128xf32>
    %234 = arith.divf %232, %233 : vector<8x128xf32>
    %235 = vector.extract_strided_slice %234 {offsets = [0, 0], sizes = [8, 64], strides = [1, 1]} : vector<8x128xf32> to vector<8x64xf32>
    %236 = vector.extract_strided_slice %234 {offsets = [0, 64], sizes = [8, 64], strides = [1, 1]} : vector<8x128xf32> to vector<8x64xf32>
    %237 = vector.extract_strided_slice %224 {offsets = [0, 128], sizes = [8, 64], strides = [1, 1]} : vector<8x192xf32> to vector<8x64xf32>
    %238 = vector.extract_strided_slice %226 {offsets = [0, 128], sizes = [8, 64], strides = [1, 1]} : vector<8x192xf32> to vector<8x64xf32>
    %239 = arith.addf %238, %72 : vector<8x64xf32>
    %240 = arith.mulf %235, %239 : vector<8x64xf32>
    %241 = arith.addf %237, %240 : vector<8x64xf32>
    %242 = math.tanh %241 : vector<8x64xf32>
    %cst_93 = arith.constant 1.000000e+00 : f32
    %243 = vector.broadcast %cst_93 : f32 to vector<8x64xf32>
    %244 = arith.subf %243, %236 : vector<8x64xf32>
    %245 = arith.mulf %244, %242 : vector<8x64xf32>
    %246 = arith.mulf %236, %222 : vector<8x64xf32>
    %247 = arith.addf %245, %246 : vector<8x64xf32>
    %c48_94 = arith.constant 48 : index
    %c0_95 = arith.constant 0 : index
    %248 = vector.load %arg24[%c48_94, %c0_95] : memref<72x64xf32, #tpu.memory_space<vmem>>, vector<8x64xf32>
    tpu.vector_store %arg24[%c48_94, %c0_95], %247 {strides = array<i32>} : memref<72x64xf32, #tpu.memory_space<vmem>>, vector<8x64xf32>,
    %c56 = arith.constant 56 : index
    %c0_96 = arith.constant 0 : index
    %249 = vector.load %arg23[%c56, %c0_96] : memref<72x192xf32, #tpu.memory_space<vmem>>, vector<8x192xf32>
    %250 = arith.truncf %247 : vector<8x64xf32> to vector<8x64xbf16>
    %cst_97 = arith.constant dense<0.000000e+00> : vector<8x192xf32>
    %251 = tpu.matmul %250, %69, %cst_97 {dimension_numbers = #tpu.dot_dimension_numbers<[1], [0], [0], [1], [0, 0, 1, 1], [], []>} : vector<8x64xbf16>, vector<64x192xbf16>, vector<8x192xf32> -> vector<8x192xf32>
    %252 = vector.extract_strided_slice %249 {offsets = [0, 0], sizes = [8, 128], strides = [1, 1]} : vector<8x192xf32> to vector<8x128xf32>
    %253 = vector.extract_strided_slice %251 {offsets = [0, 0], sizes = [8, 128], strides = [1, 1]} : vector<8x192xf32> to vector<8x128xf32>
    %254 = arith.addf %252, %253 : vector<8x128xf32>
    %255 = arith.negf %254 : vector<8x128xf32>
    %256 = math.exp %255 : vector<8x128xf32>
    %cst_98 = arith.constant 1.000000e+00 : f32
    %257 = vector.broadcast %cst_98 : f32 to vector<8x128xf32>
    %258 = arith.addf %257, %256 : vector<8x128xf32>
    %259 = arith.divf %257, %258 : vector<8x128xf32>
    %260 = vector.extract_strided_slice %259 {offsets = [0, 0], sizes = [8, 64], strides = [1, 1]} : vector<8x128xf32> to vector<8x64xf32>
    %261 = vector.extract_strided_slice %259 {offsets = [0, 64], sizes = [8, 64], strides = [1, 1]} : vector<8x128xf32> to vector<8x64xf32>
    %262 = vector.extract_strided_slice %249 {offsets = [0, 128], sizes = [8, 64], strides = [1, 1]} : vector<8x192xf32> to vector<8x64xf32>
    %263 = vector.extract_strided_slice %251 {offsets = [0, 128], sizes = [8, 64], strides = [1, 1]} : vector<8x192xf32> to vector<8x64xf32>
    %264 = arith.addf %263, %72 : vector<8x64xf32>
    %265 = arith.mulf %260, %264 : vector<8x64xf32>
    %266 = arith.addf %262, %265 : vector<8x64xf32>
    %267 = math.tanh %266 : vector<8x64xf32>
    %cst_99 = arith.constant 1.000000e+00 : f32
    %268 = vector.broadcast %cst_99 : f32 to vector<8x64xf32>
    %269 = arith.subf %268, %261 : vector<8x64xf32>
    %270 = arith.mulf %269, %267 : vector<8x64xf32>
    %271 = arith.mulf %261, %247 : vector<8x64xf32>
    %272 = arith.addf %270, %271 : vector<8x64xf32>
    %c56_100 = arith.constant 56 : index
    %c0_101 = arith.constant 0 : index
    %273 = vector.load %arg24[%c56_100, %c0_101] : memref<72x64xf32, #tpu.memory_space<vmem>>, vector<8x64xf32>
    tpu.vector_store %arg24[%c56_100, %c0_101], %272 {strides = array<i32>} : memref<72x64xf32, #tpu.memory_space<vmem>>, vector<8x64xf32>,
    %c64 = arith.constant 64 : index
    %c0_102 = arith.constant 0 : index
    %274 = vector.load %arg23[%c64, %c0_102] : memref<72x192xf32, #tpu.memory_space<vmem>>, vector<8x192xf32>
    %275 = arith.truncf %272 : vector<8x64xf32> to vector<8x64xbf16>
    %cst_103 = arith.constant dense<0.000000e+00> : vector<8x192xf32>
    %276 = tpu.matmul %275, %69, %cst_103 {dimension_numbers = #tpu.dot_dimension_numbers<[1], [0], [0], [1], [0, 0, 1, 1], [], []>} : vector<8x64xbf16>, vector<64x192xbf16>, vector<8x192xf32> -> vector<8x192xf32>
    %277 = vector.extract_strided_slice %274 {offsets = [0, 0], sizes = [8, 128], strides = [1, 1]} : vector<8x192xf32> to vector<8x128xf32>
    %278 = vector.extract_strided_slice %276 {offsets = [0, 0], sizes = [8, 128], strides = [1, 1]} : vector<8x192xf32> to vector<8x128xf32>
    %279 = arith.addf %277, %278 : vector<8x128xf32>
    %280 = arith.negf %279 : vector<8x128xf32>
    %281 = math.exp %280 : vector<8x128xf32>
    %cst_104 = arith.constant 1.000000e+00 : f32
    %282 = vector.broadcast %cst_104 : f32 to vector<8x128xf32>
    %283 = arith.addf %282, %281 : vector<8x128xf32>
    %284 = arith.divf %282, %283 : vector<8x128xf32>
    %285 = vector.extract_strided_slice %284 {offsets = [0, 0], sizes = [8, 64], strides = [1, 1]} : vector<8x128xf32> to vector<8x64xf32>
    %286 = vector.extract_strided_slice %284 {offsets = [0, 64], sizes = [8, 64], strides = [1, 1]} : vector<8x128xf32> to vector<8x64xf32>
    %287 = vector.extract_strided_slice %274 {offsets = [0, 128], sizes = [8, 64], strides = [1, 1]} : vector<8x192xf32> to vector<8x64xf32>
    %288 = vector.extract_strided_slice %276 {offsets = [0, 128], sizes = [8, 64], strides = [1, 1]} : vector<8x192xf32> to vector<8x64xf32>
    %289 = arith.addf %288, %72 : vector<8x64xf32>
    %290 = arith.mulf %285, %289 : vector<8x64xf32>
    %291 = arith.addf %287, %290 : vector<8x64xf32>
    %292 = math.tanh %291 : vector<8x64xf32>
    %cst_105 = arith.constant 1.000000e+00 : f32
    %293 = vector.broadcast %cst_105 : f32 to vector<8x64xf32>
    %294 = arith.subf %293, %286 : vector<8x64xf32>
    %295 = arith.mulf %294, %292 : vector<8x64xf32>
    %296 = arith.mulf %286, %272 : vector<8x64xf32>
    %297 = arith.addf %295, %296 : vector<8x64xf32>
    %c64_106 = arith.constant 64 : index
    %c0_107 = arith.constant 0 : index
    %298 = vector.load %arg24[%c64_106, %c0_107] : memref<72x64xf32, #tpu.memory_space<vmem>>, vector<8x64xf32>
    tpu.vector_store %arg24[%c64_106, %c0_107], %297 {strides = array<i32>} : memref<72x64xf32, #tpu.memory_space<vmem>>, vector<8x64xf32>,
    %c0_108 = arith.constant 0 : index
    %c0_109 = arith.constant 0 : index
    %299 = vector.load %arg24[%c0_108, %c0_109] : memref<72x64xf32, #tpu.memory_space<vmem>>, vector<72x64xf32>
    %c0_110 = arith.constant 0 : index
    %c0_111 = arith.constant 0 : index
    %300 = vector.load %arg16[%c0_110, %c0_111] : memref<64x64xf32, #tpu.memory_space<vmem>>, vector<64x64xf32>
    %301 = arith.truncf %299 : vector<72x64xf32> to vector<72x64xbf16>
    %302 = arith.truncf %300 : vector<64x64xf32> to vector<64x64xbf16>
    %cst_112 = arith.constant dense<0.000000e+00> : vector<72x64xf32>
    %303 = tpu.matmul %301, %302, %cst_112 {dimension_numbers = #tpu.dot_dimension_numbers<[1], [0], [0], [1], [0, 0, 1, 1], [], []>} : vector<72x64xbf16>, vector<64x64xbf16>, vector<72x64xf32> -> vector<72x64xf32>
    %c0_113 = arith.constant 0 : index
    %c0_114 = arith.constant 0 : index
    %304 = vector.load %arg17[%c0_113, %c0_114] : memref<1x64xf32, #tpu.memory_space<vmem>>, vector<1x64xf32>
    %305 = vector.broadcast %304 : vector<1x64xf32> to vector<72x64xf32>
    %306 = arith.addf %303, %305 : vector<72x64xf32>
    %cst_115 = arith.constant 0.000000e+00 : f32
    %307 = vector.broadcast %cst_115 : f32 to vector<72x64xf32>
    %308 = arith.maximumf %306, %307 : vector<72x64xf32>
    %c0_116 = arith.constant 0 : index
    %c0_117 = arith.constant 0 : index
    %309 = vector.load %arg18[%c0_116, %c0_117] : memref<64x64xf32, #tpu.memory_space<vmem>>, vector<64x64xf32>
    %310 = arith.truncf %308 : vector<72x64xf32> to vector<72x64xbf16>
    %311 = arith.truncf %309 : vector<64x64xf32> to vector<64x64xbf16>
    %cst_118 = arith.constant dense<0.000000e+00> : vector<72x64xf32>
    %312 = tpu.matmul %310, %311, %cst_118 {dimension_numbers = #tpu.dot_dimension_numbers<[1], [0], [0], [1], [0, 0, 1, 1], [], []>} : vector<72x64xbf16>, vector<64x64xbf16>, vector<72x64xf32> -> vector<72x64xf32>
    %c0_119 = arith.constant 0 : index
    %c0_120 = arith.constant 0 : index
    %313 = vector.load %arg19[%c0_119, %c0_120] : memref<1x64xf32, #tpu.memory_space<vmem>>, vector<1x64xf32>
    %314 = vector.broadcast %313 : vector<1x64xf32> to vector<72x64xf32>
    %315 = arith.addf %312, %314 : vector<72x64xf32>
    %cst_121 = arith.constant 0.000000e+00 : f32
    %316 = vector.broadcast %cst_121 : f32 to vector<72x64xf32>
    %317 = arith.maximumf %315, %316 : vector<72x64xf32>
    %c0_122 = arith.constant 0 : index
    %c0_123 = arith.constant 0 : index
    %318 = vector.load %arg20[%c0_122, %c0_123] : memref<64x128xf32, #tpu.memory_space<vmem>>, vector<64x128xf32>
    %319 = arith.truncf %317 : vector<72x64xf32> to vector<72x64xbf16>
    %320 = arith.truncf %318 : vector<64x128xf32> to vector<64x128xbf16>
    %cst_124 = arith.constant dense<0.000000e+00> : vector<72x128xf32>
    %321 = tpu.matmul %319, %320, %cst_124 {dimension_numbers = #tpu.dot_dimension_numbers<[1], [0], [0], [1], [0, 0, 1, 1], [], []>} : vector<72x64xbf16>, vector<64x128xbf16>, vector<72x128xf32> -> vector<72x128xf32>
    %c0_125 = arith.constant 0 : index
    %c0_126 = arith.constant 0 : index
    %322 = vector.load %arg21[%c0_125, %c0_126] : memref<1x128xf32, #tpu.memory_space<vmem>>, vector<1x128xf32>
    %323 = vector.broadcast %322 : vector<1x128xf32> to vector<72x128xf32>
    %324 = arith.addf %321, %323 : vector<72x128xf32>
    %c0_127 = arith.constant 0 : index
    %c0_128 = arith.constant 0 : index
    %325 = vector.load %arg22[%c0_127, %c0_128] : memref<72x128xf32, #tpu.memory_space<vmem>>, vector<72x128xf32>
    tpu.vector_store %arg22[%c0_127, %c0_128], %324 {strides = array<i32>} : memref<72x128xf32, #tpu.memory_space<vmem>>, vector<72x128xf32>,
    return
  }
  func.func @transform_0(%arg0: i32) -> (i32, i32) {
    %c0_i32 = arith.constant 0 : i32
    %c0_i32_0 = arith.constant 0 : i32
    %c0_i32_1 = arith.constant 0 : i32
    return %c0_i32, %c0_i32_0 : i32, i32
  }
  func.func @transform_1(%arg0: i32) -> (i32, i32) {
    %c0_i32 = arith.constant 0 : i32
    %c0_i32_0 = arith.constant 0 : i32
    %c0_i32_1 = arith.constant 0 : i32
    return %c0_i32, %c0_i32_0 : i32, i32
  }
  func.func @transform_2(%arg0: i32) -> (i32, i32) {
    %c0_i32 = arith.constant 0 : i32
    %c0_i32_0 = arith.constant 0 : i32
    %c0_i32_1 = arith.constant 0 : i32
    return %c0_i32, %c0_i32_0 : i32, i32
  }
  func.func @transform_3(%arg0: i32) -> (i32, i32) {
    %c0_i32 = arith.constant 0 : i32
    %c0_i32_0 = arith.constant 0 : i32
    %c0_i32_1 = arith.constant 0 : i32
    return %c0_i32, %c0_i32_0 : i32, i32
  }
  func.func @transform_4(%arg0: i32) -> (i32, i32) {
    %c0_i32 = arith.constant 0 : i32
    %c0_i32_0 = arith.constant 0 : i32
    %c0_i32_1 = arith.constant 0 : i32
    return %c0_i32, %c0_i32_0 : i32, i32
  }
  func.func @transform_5(%arg0: i32) -> (i32, i32) {
    %c0_i32 = arith.constant 0 : i32
    %c0_i32_0 = arith.constant 0 : i32
    %c0_i32_1 = arith.constant 0 : i32
    return %c0_i32, %c0_i32_0 : i32, i32
  }
  func.func @transform_6(%arg0: i32) -> (i32, i32) {
    %c0_i32 = arith.constant 0 : i32
    %c0_i32_0 = arith.constant 0 : i32
    %c0_i32_1 = arith.constant 0 : i32
    return %c0_i32, %c0_i32_0 : i32, i32
  }
  func.func @transform_7(%arg0: i32) -> (i32, i32) {
    %c0_i32 = arith.constant 0 : i32
    %c0_i32_0 = arith.constant 0 : i32
    %c0_i32_1 = arith.constant 0 : i32
    return %c0_i32, %c0_i32_0 : i32, i32
  }
  func.func @transform_8(%arg0: i32) -> (i32, i32) {
    %c0_i32 = arith.constant 0 : i32
    %c0_i32_0 = arith.constant 0 : i32
    %c0_i32_1 = arith.constant 0 : i32
    return %c0_i32, %c0_i32_0 : i32, i32
  }
  func.func @transform_9(%arg0: i32) -> (i32, i32) {
    %c0_i32 = arith.constant 0 : i32
    %c0_i32_0 = arith.constant 0 : i32
    %c0_i32_1 = arith.constant 0 : i32
    return %c0_i32, %c0_i32_0 : i32, i32
  }
  func.func @transform_10(%arg0: i32) -> (i32, i32) {
    %c0_i32 = arith.constant 0 : i32
    %c0_i32_0 = arith.constant 0 : i32
    %c0_i32_1 = arith.constant 0 : i32
    return %c0_i32, %c0_i32_0 : i32, i32
  }
  func.func @transform_11(%arg0: i32) -> (i32, i32) {
    %c0_i32 = arith.constant 0 : i32
    %c0_i32_0 = arith.constant 0 : i32
    %c0_i32_1 = arith.constant 0 : i32
    return %c0_i32, %c0_i32_0 : i32, i32
  }
  func.func @transform_12(%arg0: i32) -> (i32, i32) {
    %c0_i32 = arith.constant 0 : i32
    %c0_i32_0 = arith.constant 0 : i32
    %c0_i32_1 = arith.constant 0 : i32
    return %c0_i32, %c0_i32_0 : i32, i32
  }
  func.func @transform_13(%arg0: i32) -> (i32, i32) {
    %c0_i32 = arith.constant 0 : i32
    %c0_i32_0 = arith.constant 0 : i32
    %c0_i32_1 = arith.constant 0 : i32
    return %c0_i32, %c0_i32_0 : i32, i32
  }
  func.func @transform_14(%arg0: i32) -> (i32, i32) {
    %c0_i32 = arith.constant 0 : i32
    %c0_i32_0 = arith.constant 0 : i32
    %c0_i32_1 = arith.constant 0 : i32
    return %c0_i32, %c0_i32_0 : i32, i32
  }
  func.func @transform_15(%arg0: i32) -> (i32, i32) {
    %c0_i32 = arith.constant 0 : i32
    %c0_i32_0 = arith.constant 0 : i32
    %c0_i32_1 = arith.constant 0 : i32
    return %c0_i32, %c0_i32_0 : i32, i32
  }
  func.func @transform_16(%arg0: i32) -> (i32, i32) {
    %c0_i32 = arith.constant 0 : i32
    %c0_i32_0 = arith.constant 0 : i32
    %c0_i32_1 = arith.constant 0 : i32
    return %c0_i32, %c0_i32_0 : i32, i32
  }
  func.func @transform_17(%arg0: i32) -> (i32, i32) {
    %c0_i32 = arith.constant 0 : i32
    %c0_i32_0 = arith.constant 0 : i32
    %c0_i32_1 = arith.constant 0 : i32
    return %c0_i32, %c0_i32_0 : i32, i32
  }
  func.func @transform_18(%arg0: i32) -> (i32, i32) {
    %c0_i32 = arith.constant 0 : i32
    %c0_i32_0 = arith.constant 0 : i32
    %c0_i32_1 = arith.constant 0 : i32
    return %c0_i32, %c0_i32_0 : i32, i32
  }
  func.func @transform_19(%arg0: i32) -> (i32, i32) {
    %c0_i32 = arith.constant 0 : i32
    %c0_i32_0 = arith.constant 0 : i32
    %c0_i32_1 = arith.constant 0 : i32
    return %c0_i32, %c0_i32_0 : i32, i32
  }
  func.func @transform_20(%arg0: i32) -> (i32, i32) {
    %c0_i32 = arith.constant 0 : i32
    %c0_i32_0 = arith.constant 0 : i32
    %c0_i32_1 = arith.constant 0 : i32
    return %c0_i32, %c0_i32_0 : i32, i32
  }
  func.func @transform_21(%arg0: i32) -> (i32, i32) {
    %c0_i32 = arith.constant 0 : i32
    %c0_i32_0 = arith.constant 0 : i32
    %c0_i32_1 = arith.constant 0 : i32
    return %c0_i32, %c0_i32_0 : i32, i32
  }
}

</mosaic_0001>

<bundles_post_ra>
// kernel: dqn_rnn_forward.1
= control target key start
LH: loop header
LB: loop body
LE: loop exit
PB: predicated region body
PF: predicated region fallthrough
CT: control target
= control target key end

     0   :  { %v1761_v0 = vmov 0   ;;  %vm90_vm0 = vcmask 130048   ;;  %vm296_vm1 = vcmask 1041408   ;;  %vm283_vm2 = vcmask 31744   ;;  %s2692_s1 = inlined_call_operand.vmem [shape: f32[64,1], index: 1, kind: input, shape index: {}]   ;;  %s2693_s7 = inlined_call_operand.vmem [shape: f32[16,64], index: 7, kind: input, shape index: {}]   ;;  %s2694_s2 = inlined_call_operand.vmem [shape: f32[72,16], index: 2, kind: input, shape index: {}]   ;;  %s2695_s3 = inlined_call_operand.vmem [shape: f32[4,32], index: 3, kind: input, shape index: {}]   ;;  %s2696_s0 = inlined_call_operand.vmem [shape: f32[64,4], index: 0, kind: input, shape index: {}]   ;;  %s2697_s5 = inlined_call_operand.vmem [shape: f32[1,32], index: 5, kind: input, shape index: {}]   ;;  %s2698_s8 = inlined_call_operand.vmem [shape: f32[1,64], index: 8, kind: input, shape index: {}]   ;;  %s2699_s10 = inlined_call_operand.vmem [shape: f32[32,192], index: 10, kind: input, shape index: {}]   ;;  %s2700_s11 = inlined_call_operand.vmem [shape: f32[64,192], index: 11, kind: input, shape index: {}]   ;;  %s2701_s6 = inlined_call_operand.vmem [shape: f32[1,32], index: 6, kind: input, shape index: {}]   ;;  %s2702_s9 = inlined_call_operand.vmem [shape: f32[32,192], index: 9, kind: input, shape index: {}]   ;;  %s2703_s4 = inlined_call_operand.vmem [shape: f32[1,32], index: 4, kind: input, shape index: {}]   ;;  %s2704_s13 = inlined_call_operand.vmem [shape: f32[64,192], index: 13, kind: input, shape index: {}]   ;;  %s2705_s12 = inlined_call_operand.vmem [shape: f32[1,192], index: 12, kind: input, shape index: {}]   ;;  %s2706_s14 = inlined_call_operand.vmem [shape: f32[1,64], index: 14, kind: input, shape index: {}]   ;;  %s2707_s15 = inlined_call_operand.vmem [shape: f32[64,64], index: 15, kind: input, shape index: {}]   ;;  %s2708_s16 = inlined_call_operand.vmem [shape: f32[1,64], index: 16, kind: input, shape index: {}]   ;;  %s2709_s17 = inlined_call_operand.vmem [shape: f32[64,64], index: 17, kind: input, shape index: {}]   ;;  %s2710_s18 = inlined_call_operand.vmem [shape: f32[1,64], index: 18, kind: input, shape index: {}]   ;;  %s2711_s19 = inlined_call_operand.vmem [shape: f32[64,128], index: 19, kind: input, shape index: {}]   ;;  %s2712_s20 = inlined_call_operand.vmem [shape: f32[1,128], index: 20, kind: input, shape index: {}]   ;;  %s2713_s21 = inlined_call_operand.vmem [shape: f32[72,128], index: 21, kind: output, shape index: {}]  }
   0x1   :  { %2718 = sst [smem:[#allocation4_spill]] %s2692_s1  ;;  %1696 = vset.pattern.permute.xlu0 %v1761_v0  ;;  %1697 = vset.pattern.permute.xlu1 %v1761_v0  ;;  %v438_v41 = vld [vmem:[%s2699_s10 + $0x28] sm:$0xff]  ;;  %v440_v42 = vld [vmem:[%s2699_s10 + $0x38] sm:$0xff]  ;;  %v437_v44 = vld [vmem:[%s2699_s10 + $0x20] sm:$0xff]  ;;  %vm449_vm3 = vcmask 261120   ;;  %vm183_vm4 = vcmask 523264  }
   0x2   :  { %2719 = sst [smem:[#allocation5_spill]] %s2693_s7  ;;  %1698 = vset.pattern.permute.xlu2 %v1761_v0  ;;  %v1975_v43 = vpack.c.bf16 %v440_v42, %v438_v41  ;;  %v439_v45 = vld [vmem:[%s2699_s10 + $0x30] sm:$0xff]  ;;  %v433_v47 = vld [vmem:[%s2699_s10] sm:$0xff]  ;;  %v434_v49 = vld [vmem:[%s2699_s10 + $0x8] sm:$0xff] }
   0x3   :  { %2720 = sst [smem:[#allocation6_spill]] %s2694_s2  ;;  %v1984_v46 = vpack.c.bf16 %v439_v45, %v437_v44  ;;  %v435_v48 = vld [vmem:[%s2699_s10 + $0x10] sm:$0xff]  ;;  %v436_v51 = vld [vmem:[%s2699_s10 + $0x18] sm:$0xff]  ;;  %v160_v53 = vld [vmem:[%s2700_s11 + $0x60] sm:$0xff] }
   0x4   :  { %2721 = sst [smem:[#allocation7_spill]] %s2695_s3  ;;  %v1996_v50 = vpack.c.bf16 %v435_v48, %v433_v47  ;;  %v2001_v52 = vpack.c.bf16 %v436_v51, %v434_v49  ;;  %v162_v54 = vld [vmem:[%s2700_s11 + $0x70] sm:$0xff]  ;;  %v156_v56 = vld [vmem:[%s2700_s11 + $0x40] sm:$0xff] }
   0x5   :  { %2722 = sst [smem:[#allocation8_spill]] %s2696_s0  ;;  %v175_v55 = vpack.c.bf16 %v162_v54, %v160_v53  ;;  %v158_v57 = vld [vmem:[%s2700_s11 + $0x50] sm:$0xff]  ;;  %v152_v59 = vld [vmem:[%s2700_s11 + $0x20] sm:$0xff] }
   0x6   :  { %2723 = sst [smem:[#allocation9_spill]] %s2697_s5  ;;  %v173_v58 = vpack.c.bf16 %v158_v57, %v156_v56  ;;  %v154_v60 = vld [vmem:[%s2700_s11 + $0x30] sm:$0xff]  ;;  %v148_v62 = vld [vmem:[%s2700_s11] sm:$0xff] }
   0x7   :  { %s2724_s26 = sld [smem:[#allocation4_spill]]  ;;  %203 = vmatpush.bf16.msra.mxu1 %v175_v55  ;;  %v171_v61 = vpack.c.bf16 %v154_v60, %v152_v59  ;;  %v150_v63 = vld [vmem:[%s2700_s11 + $0x10] sm:$0xff]  ;;  %v421_v57 = vld [vmem:[%s2702_s9 + $0x20] sm:$0xff] }
   0x8   :  { %s2725_s28 = sld [smem:[#allocation5_spill]] }
   0x9   :  { %s2726_s5 = sld [smem:[#allocation6_spill]] }
   0xa   :  { %s2728_s1 = sld [smem:[#allocation8_spill]] }
   0xb   :  { %204 = vmatpush.bf16.msra.mxu1 %v173_v58  ;;  %s2729_s10 = sld [smem:[#allocation9_spill]]  ;;  %v423_v58 = vld [vmem:[%s2702_s9 + $0x30] sm:$0xff] }
   0xc   :  { %v431_v60 = vpack.c.bf16 %v423_v58, %v421_v57 }
   0xd   :  { %v337_v1 = vld [vmem:[%s2724_s26] sm:$0xff]  ;;  %v339_v8 = vld [vmem:[%s2724_s26 + $0x10] sm:$0xff]  ;;  %v338_v9 = vld [vmem:[%s2724_s26 + $0x8] sm:$0xff] }
   0xe   :  { %v78_v2 = vld [vmem:[%s2725_s28] sm:$0xff]  ;;  %v79_v3 = vld [vmem:[%s2725_s28 + $0x8] sm:$0xff]  ;;  %348 = vperm.xlu0 %1696, %v337_v1   ;;  %358 = vperm.xlu1 %1697, %v339_v8   ;;  %s2727_s28 = sld [smem:[#allocation7_spill]]  ;;  %v340_v14 = vld [vmem:[%s2724_s26 + $0x18] sm:$0xff]  ;;  %v169_v1 = vpack.c.bf16 %v150_v63, %v148_v62 }
   0xf   :  { %v85_v4 = vpack.c.bf16 %v79_v3, %v78_v2  ;;  %v69_v5 = vld [vmem:[%s2726_s5] sm:$0xff]  ;;  %v70_v6 = vld [vmem:[%s2726_s5 + $0x8] sm:$0xff]  ;;  %v71_v17 = vld [vmem:[%s2726_s5 + $0x10] sm:$0xff]  ;;  %205 = vmatpush.bf16.msra.mxu1 %v171_v61 }
  0x10   :  { %v80_v7 = vpack.c.bf16 %v70_v6, %v69_v5  ;;  %v265_v11 = vld [vmem:[%s2728_s1] sm:$0xff]  ;;  %v266_v12 = vld [vmem:[%s2728_s1 + $0x8] sm:$0xff]  ;;  %v72_v18 = vld [vmem:[%s2726_s5 + $0x18] sm:$0xff] }
  0x11   :  { %113 = vmatpush.bf16.msra.mxu0 %v85_v4  ;;  %v274_v16 = vpack.c.bf16 %v266_v12, %v265_v11  ;;  %v81_v19 = vpack.c.bf16 %v72_v18, %v71_v17  ;;  %v341_v20 = vld [vmem:[%s2724_s26 + $0x20] sm:$0xff]  ;;  %v344_v21 = vld [vmem:[%s2724_s26 + $0x38] sm:$0xff]  ;;  %v343_v22 = vld [vmem:[%s2724_s26 + $0x30] sm:$0xff] }
  0x12   :  { %368 = vperm.xlu2 %1698, %v341_v20   ;;  %v267_v23 = vld [vmem:[%s2728_s1 + $0x10] sm:$0xff]  ;;  %v268_v24 = vld [vmem:[%s2728_s1 + $0x18] sm:$0xff]  ;;  %v342_v26 = vld [vmem:[%s2724_s26 + $0x28] sm:$0xff] }
  0x13   :  { %v275_v25 = vpack.c.bf16 %v268_v24, %v267_v23  ;;  %v73_v27 = vld [vmem:[%s2726_s5 + $0x20] sm:$0xff]  ;;  %v74_v28 = vld [vmem:[%s2726_s5 + $0x28] sm:$0xff]  ;;  %v75_v33 = vld [vmem:[%s2726_s5 + $0x30] sm:$0xff]  ;;  %206 = vmatpush.bf16.msra.mxu1 %v169_v1 }
  0x14   :  { %1609 = vmatmul.msk.bf16.vlgmr.msra.gmra.mxu0 %vm90_vm0, %v80_v7  ;;  %v273_v10 = vld [vmem:[%s2727_s28] sm:$0xf]  ;;  %v82_v29 = vpack.c.bf16 %v74_v28, %v73_v27  ;;  %v270_v31 = vld [vmem:[%s2728_s1 + $0x28] sm:$0xff]  ;;  %v76_v34 = vld [vmem:[%s2726_s5 + $0x38] sm:$0xff] }
  0x15   :  { %v278_v13 = vpack.c.bf16 %v273_v10, %v273_v10  ;;  %v269_v30 = vld [vmem:[%s2728_s1 + $0x20] sm:$0xff]  ;;  %v83_v35 = vpack.c.bf16 %v76_v34, %v75_v33  ;;  %v271_v36 = vld [vmem:[%s2728_s1 + $0x30] sm:$0xff]  ;;  %v272_v37 = vld [vmem:[%s2728_s1 + $0x38] sm:$0xff]  ;;  %497 = vmatpush.bf16.msrb.mxu0 %v1975_v43 }
  0x16   :  { %353 = vperm.xlu0 %1696, %v338_v9   ;;  %363 = vperm.xlu1 %1697, %v340_v14   ;;  %v276_v32 = vpack.c.bf16 %v270_v31, %v269_v30  ;;  %v277_v38 = vpack.c.bf16 %v272_v37, %v271_v36  ;;  %v77_v39 = vld [vmem:[%s2726_s5 + $0x40] sm:$0xff]  ;;  %v161_v2 = vld [vmem:[%s2700_s11 + $0x68] sm:$0xff]  ;;  %v163_v3 = vld [vmem:[%s2700_s11 + $0x78] sm:$0xff] }
  0x17   :  { %v298_v15 = vsel %vm296_vm1, %v278_v13, 0  ;;  %v84_v40 = vpack.c.bf16 %v77_v39, %v77_v39  ;;  %v176_v4 = vpack.c.bf16 %v163_v3, %v161_v2  ;;  %v2038_v5 = vld [vmem:[%s2729_s10] ss:$0 sm:$0xff]  ;;  %v157_v7 = vld [vmem:[%s2700_s11 + $0x48] sm:$0xff]  ;;  %v159_v8 = vld [vmem:[%s2700_s11 + $0x58] sm:$0xff] }
  0x18   :  { %307 = vmatpush.bf16.msra.mxu3 %v298_v15  ;;  %v174_v9 = vpack.c.bf16 %v159_v8, %v157_v7  ;;  %v2049_v10 = vld [vmem:[%s2701_s6] ss:$0 sm:$0xff]  ;;  %v153_v13 = vld [vmem:[%s2700_s11 + $0x28] sm:$0xff]  ;;  %v155_v14 = vld [vmem:[%s2700_s11 + $0x38] sm:$0xff] }
  0x19   :  { %498 = vmatpush.bf16.msrb.mxu0 %v2001_v52  ;;  %1688 = vmatpush.bf16.msra.mxu2 %v176_v4  ;;  %v172_v15 = vpack.c.bf16 %v155_v14, %v153_v13  ;;  %v151_v20 = vld [vmem:[%s2700_s11 + $0x18] sm:$0xff]  ;;  %v422_v27 = vld [vmem:[%s2702_s9 + $0x28] sm:$0xff]  ;;  %v2083_v33 = vld [vmem:[%s2698_s8] ss:$0 sm:$0xff] }
  0x1a   :  { %373 = vperm.xlu2 %1698, %v342_v26   ;;  %236 = vmatpush.bf16.msrb.mxu1 %v176_v4  ;;  %v424_v28 = vld [vmem:[%s2702_s9 + $0x38] sm:$0xff]  ;;  %v417_v4 = vld [vmem:[%s2702_s9] sm:$0xff]  ;;  %v418_v13 = vld [vmem:[%s2702_s9 + $0x8] sm:$0xff] }
  0x1b   :  { %1624 = vmatmul.msk.bf16.vlgmr.msra.gmra.mxu3 %vm283_vm2, %v274_v16  ;;  %v2073_v30 = vpack.c.bf16 %v424_v28, %v422_v27  ;;  %v420_v14 = vld [vmem:[%s2702_s9 + $0x18] sm:$0xff] }
  0x1c   :  { %468 = vmatpush.bf16.msrb.mxu3 %v1984_v46 }
  0x1d   :  { %1689 = vmatpush.bf16.msra.mxu2 %v174_v9  ;;  %538 = vmatpush.bf16.msra.mxu0 %v431_v60 }
  0x1e   :  { %383 = vperm.xlu1 %1697, %v344_v21   ;;  %378 = vperm.xlu0 %1696, %v343_v22  }
  0x1f   :  { %237 = vmatpush.bf16.msrb.mxu1 %v174_v9 }
  0x20   :  { %469 = vmatpush.bf16.msrb.mxu3 %v1996_v50 }
  0x21   :  { %1690 = vmatpush.bf16.msra.mxu2 %v172_v15 }
  0x23   :  { %238 = vmatpush.bf16.msrb.mxu1 %v172_v15 }
  0x24   :  { %1610 = vmatmul.msk.bf16.gmra.mxu0 %vm90_vm0, %v81_v19  ;;  %v149_v19 = vld [vmem:[%s2700_s11 + $0x8] sm:$0xff]  ;;  %632 = vmatpush.bf16.msra.mxu3 %v431_v60 }
  0x25   :  { %v170_v21 = vpack.c.bf16 %v151_v20, %v149_v19 }
  0x27   :  { %1691 = vmatpush.bf16.msra.mxu2 %v170_v21  ;;  %239 = vmatpush.bf16.msrb.mxu1 %v170_v21 }
  0x2b   :  { %1625 = vmatmul.msk.bf16.gmra.mxu3 %vm283_vm2, %v275_v25  ;;  %567 = vmatpush.bf16.msrb.mxu2 %v2073_v30 }
  0x34   :  { %1611 = vmatmul.msk.bf16.gmra.mxu0 %vm90_vm0, %v82_v29 }
  0x3b   :  { %1626 = vmatmul.msk.bf16.gmra.mxu3 %vm283_vm2, %v276_v32 }
  0x44   :  { %1612 = vmatmul.msk.bf16.gmra.mxu0 %vm90_vm0, %v83_v35 }
  0x4b   :  { %1627 = vmatmul.msk.bf16.gmra.mxu3 %vm283_vm2, %v277_v38 }
  0x54   :  { %1613 = vmatmul.msk.bf16.gmra.mxu0 %vm90_vm0, %v84_v40 }
  0x6c   :  { %v369_v34 = vpop.permute.xlu2 %368 }
  0x6d   :  { %v393_v51 = vmul.f32 %v2038_v5, %v369_v34 }
  0x6f   :  { %v405_v54 = vadd.f32 %v2049_v10, %v393_v51 }
  0x71   :  { %v413_v61 = vmax.f32 %v405_v54, 0.0 }
  0x74   :  { %v374_v48 = vpop.permute.xlu2 %373 }
  0x75   :  { %v394_v53 = vmul.f32 %v2038_v5, %v374_v48  ;;  %v704_v48 = vld [vmem:[%s2704_s13 + $0x70] sm:$0xff] }
  0x77   :  { %v406_v55 = vadd.f32 %v2049_v10, %v394_v53 }
  0x79   :  { %v414_v63 = vmax.f32 %v406_v55, 0.0 }
  0x7b   :  { %v443_v9 = vpack.c.bf16 %v414_v63, %v413_v61 }
  0x80   :  { %v349_v6 = vpop.permute.xlu0 %348  ;;  %v359_v12 = vpop.permute.xlu1 %358 }
  0x81   :  { %v389_v11 = vmul.f32 %v2038_v5, %v349_v6  ;;  %v391_v31 = vmul.f32 %v2038_v5, %v359_v12  ;;  %v419_v6 = vld [vmem:[%s2702_s9 + $0x10] sm:$0xff] }
  0x82   :  { %v429_v7 = vpack.c.bf16 %v419_v6, %v417_v4 }
  0x83   :  { %v401_v16 = vadd.f32 %v2049_v10, %v389_v11  ;;  %v403_v35 = vadd.f32 %v2049_v10, %v391_v31 }
  0x84   :  { %539 = vmatpush.bf16.msra.mxu0 %v429_v7  ;;  %633 = vmatpush.bf16.msra.mxu3 %v429_v7 }
  0x85   :  { %v409_v22 = vmax.f32 %v401_v16, 0.0  ;;  %v411_v39 = vmax.f32 %v403_v35, 0.0  ;;  %v2121_v16 = vpack.c.bf16 %v420_v14, %v418_v13  ;;  %v694_v14 = vld [vmem:[%s2704_s13 + $0x20] sm:$0xff] }
  0x87   :  { %568 = vmatpush.bf16.msrb.mxu2 %v2121_v16 }
  0x88   :  { %v354_v17 = vpop.permute.xlu0 %353  ;;  %v364_v25 = vpop.permute.xlu1 %363 }
  0x89   :  { %v390_v18 = vmul.f32 %v2038_v5, %v354_v17  ;;  %v392_v32 = vmul.f32 %v2038_v5, %v364_v25 }
  0x8b   :  { %v402_v23 = vadd.f32 %v2049_v10, %v390_v18  ;;  %v404_v36 = vadd.f32 %v2049_v10, %v392_v32 }
  0x8d   :  { %v410_v24 = vmax.f32 %v402_v23, 0.0  ;;  %v412_v41 = vmax.f32 %v404_v36, 0.0 }
  0x8f   :  { %v441_v26 = vpack.c.bf16 %v410_v24, %v409_v22  ;;  %v442_v47 = vpack.c.bf16 %v412_v41, %v411_v39 }
  0x90   :  { %v384_v11 = vpop.permute.xlu1 %383  ;;  %v379_v12 = vpop.permute.xlu0 %378 }
  0x91   :  { %v115_v29 = vpop.f32.mrf.mxu0  ;;  %1628 = vmatmul.msk.bf16.vlgmr.msrb.gmra.mxu3 %vm449_vm3, %v441_v26  ;;  %1632 = vmatmul.msk.bf16.vlgmr.msrb.gmra.mxu0 %vm449_vm3, %v441_v26  ;;  %v396_v17 = vmul.f32 %v2038_v5, %v384_v11  ;;  %v395_v18 = vmul.f32 %v2038_v5, %v379_v12 }
  0x92   :  { %v116_v37 = vadd.f32 %v2083_v33, %v115_v29  ;;  %616 = vmatpush.bf16.msrb.mxu0 %v1975_v43 }
  0x93   :  { %v408_v20 = vadd.f32 %v2049_v10, %v396_v17  ;;  %v407_v21 = vadd.f32 %v2049_v10, %v395_v18  ;;  %v2139_v10 = vld [vmem:[%s2703_s4] ss:$0 sm:$0xff] }
  0x94   :  { %v139_v42 = vmax.f32 %v116_v37, 0.0 }
  0x95   :  { %v416_v24 = vmax.f32 %v408_v20, 0.0  ;;  %v415_v25 = vmax.f32 %v407_v21, 0.0 }
  0x96   :  { %617 = vmatpush.bf16.msrb.mxu0 %v2001_v52 }
  0x97   :  { %v444_v5 = vpack.c.bf16 %v416_v24, %v415_v25  ;;  %v690_v24 = vld [vmem:[%s2704_s13] sm:$0xff] }
  0x99   :  { %v117_v38 = vpop.f32.mrf.mxu0 }
  0x9a   :  { %v118_v40 = vadd.f32 %v2083_v33, %v117_v38 }
  0x9c   :  { %v140_v44 = vmax.f32 %v118_v40, 0.0 }
  0x9e   :  { %v2089_v45 = vpack.c.bf16 %v140_v44, %v139_v42  ;;  %v309_v1 = vpop.f32.mrf.mxu3 }
  0x9f   :  { %v310_v31 = vadd.f32 %v2139_v10, %v309_v1 }
  0xa0   :  { %1614 = vmatmul.msk.bf16.vlgmr.msra.gmra.mxu1 %vm183_vm4, %v2089_v45 }
  0xa1   :  { %v120_v49 = vpop.f32.mrf.mxu0  ;;  %1629 = vmatmul.msk.bf16.gmra.mxu3 %vm449_vm3, %v442_v47  ;;  %1633 = vmatmul.msk.bf16.gmra.mxu0 %vm449_vm3, %v442_v47  ;;  %v329_v37 = vmax.f32 %v310_v31, 0.0  ;;  %v702_v47 = vld [vmem:[%s2704_s13 + $0x60] sm:$0xff] }
  0xa2   :  { %v121_v56 = vadd.f32 %v2083_v33, %v120_v49  ;;  %1692 = vmatpush.bf16.msra.mxu1 %v431_v60  ;;  %v2155_v51 = vpack.c.bf16 %v704_v48, %v702_v47 }
  0xa4   :  { %v141_v2 = vmax.f32 %v121_v56, 0.0  ;;  %799 = vmatpush.bf16.msrb.mxu3 %v2155_v51 }
  0xa6   :  { %1693 = vmatpush.bf16.msra.mxu1 %v429_v7  ;;  %v311_v19 = vpop.f32.mrf.mxu3 }
  0xa7   :  { %v312_v32 = vadd.f32 %v2139_v10, %v311_v19 }
  0xa9   :  { %v122_v59 = vpop.f32.mrf.mxu0  ;;  %v330_v39 = vmax.f32 %v312_v32, 0.0 }
  0xaa   :  { %v123_v62 = vadd.f32 %v2083_v33, %v122_v59 }
  0xab   :  { %v425_v42 = vpack.c.bf16 %v330_v39, %v329_v37  ;;  %v695_v37 = vld [vmem:[%s2704_s13 + $0x28] sm:$0xff] }
  0xac   :  { %v142_v3 = vmax.f32 %v123_v62, 0.0  ;;  %v279_v62 = vld [vmem:[%s2703_s4] sm:$0x1] }
  0xae   :  { %v165_v8 = vpack.c.bf16 %v142_v3, %v141_v2  ;;  %v314_v29 = vpop.f32.mrf.mxu3  ;;  %v700_v2 = vld [vmem:[%s2704_s13 + $0x50] sm:$0xff]  ;;  %v590_v3 = vmax.f32 %v279_v62, 0.0 }
  0xaf   :  { %v315_v55 = vadd.f32 %v2139_v10, %v314_v29 }
  0xb0   :  { %1615 = vmatmul.msk.bf16.gmra.mxu1 %vm183_vm4, %v165_v8  ;;  %1620 = vmatmul.msk.bf16.vlgmr.msra.gmra.mxu2 %vm183_vm4, %v165_v8  ;;  %v2177_v6 = vpack.c.bf16 %v590_v3, %v590_v3 }
  0xb1   :  { %v125_v15 = vpop.f32.mrf.mxu0  ;;  %1630 = vmatmul.msk.bf16.gmra.mxu3 %vm449_vm3, %v443_v9  ;;  %1634 = vmatmul.msk.bf16.gmra.mxu0 %vm449_vm3, %v443_v9  ;;  %v331_v59 = vmax.f32 %v315_v55, 0.0 }
  0xb2   :  { %v126_v22 = vadd.f32 %v2083_v33, %v125_v15  ;;  %727 = vmatpush.bf16.msra.mxu2 %v2155_v51  ;;  %v696_v15 = vld [vmem:[%s2704_s13 + $0x30] sm:$0xff] }
  0xb3   :  { %v2195_v18 = vpack.c.bf16 %v696_v15, %v694_v14 }
  0xb4   :  { %v143_v26 = vmax.f32 %v126_v22, 0.0 }
  0xb6   :  { %v316_v36 = vpop.f32.mrf.mxu3 }
  0xb7   :  { %v317_v56 = vadd.f32 %v2139_v10, %v316_v36 }
  0xb9   :  { %v127_v43 = vpop.f32.mrf.mxu0  ;;  %v332_v60 = vmax.f32 %v317_v56, 0.0 }
  0xba   :  { %v128_v23 = vadd.f32 %v2083_v33, %v127_v43 }
  0xbb   :  { %v426_v1 = vpack.c.bf16 %v332_v60, %v331_v59 }
  0xbc   :  { %v144_v27 = vmax.f32 %v128_v23, 0.0 }
  0xbe   :  { %v166_v28 = vpack.c.bf16 %v144_v27, %v143_v26  ;;  %v319_v53 = vpop.f32.mrf.mxu3  ;;  %v703_v27 = vld [vmem:[%s2704_s13 + $0x68] sm:$0xff] }
  0xbf   :  { %v320_v7 = vadd.f32 %v2139_v10, %v319_v53 }
  0xc0   :  { %1616 = vmatmul.msk.bf16.gmra.mxu1 %vm183_vm4, %v166_v28  ;;  %1621 = vmatmul.msk.bf16.gmra.mxu2 %vm183_vm4, %v166_v28  ;;  %v705_v28 = vld [vmem:[%s2704_s13 + $0x78] sm:$0xff] }
  0xc1   :  { %v130_v52 = vpop.f32.mrf.mxu0  ;;  %1631 = vmatmul.msk.bf16.gmra.mxu3 %vm449_vm3, %v444_v5  ;;  %1635 = vmatmul.msk.bf16.gmra.mxu0 %vm449_vm3, %v444_v5  ;;  %v333_v11 = vmax.f32 %v320_v7, 0.0  ;;  %v2246_v5 = vpack.c.bf16 %v705_v28, %v703_v27 }
  0xc2   :  { %v131_v34 = vadd.f32 %v2083_v33, %v130_v52  ;;  %v699_v52 = vld [vmem:[%s2704_s13 + $0x48] sm:$0xff] }
  0xc4   :  { %v145_v40 = vmax.f32 %v131_v34, 0.0 }
  0xc6   :  { %v321_v63 = vpop.f32.mrf.mxu3 }
  0xc7   :  { %v322_v8 = vadd.f32 %v2139_v10, %v321_v63 }
  0xc9   :  { %v132_v35 = vpop.f32.mrf.mxu0  ;;  %v334_v12 = vmax.f32 %v322_v8, 0.0 }
  0xca   :  { %v133_v38 = vadd.f32 %v2083_v33, %v132_v35 }
  0xcb   :  { %v427_v13 = vpack.c.bf16 %v334_v12, %v333_v11 }
  0xcc   :  { %v146_v41 = vmax.f32 %v133_v38, 0.0  ;;  %v697_v38 = vld [vmem:[%s2704_s13 + $0x38] sm:$0xff] }
  0xcd   :  { %v2277_v39 = vpack.c.bf16 %v697_v38, %v695_v37 }
  0xce   :  { %v167_v44 = vpack.c.bf16 %v146_v41, %v145_v40  ;;  %v324_v9 = vpop.f32.mrf.mxu3  ;;  %v691_v40 = vld [vmem:[%s2704_s13 + $0x8] sm:$0xff]  ;;  %v693_v41 = vld [vmem:[%s2704_s13 + $0x18] sm:$0xff] }
  0xd0   :  { %1617 = vmatmul.msk.bf16.gmra.mxu1 %vm183_vm4, %v167_v44  ;;  %1622 = vmatmul.msk.bf16.gmra.mxu2 %vm183_vm4, %v167_v44  ;;  %v2287_v44 = vpack.c.bf16 %v693_v41, %v691_v40 }
  0xd1   :  { %v135_v49 = vpop.f32.mrf.mxu0  ;;  %1636 = vmatmul.msk.bf16.vlgmr.msra.gmra.mxu0 %vm449_vm3, %v425_v42  ;;  %1646 = vmatmul.msk.bf16.vlgmr.msra.gmra.mxu3 %vm449_vm3, %v2177_v6 }
  0xd2   :  { %v136_v54 = vadd.f32 %v2083_v33, %v135_v49  ;;  %v698_v33 = vld [vmem:[%s2704_s13 + $0x40] sm:$0xff]  ;;  %740 = vmatpush.bf16.msra.mxu0 %v2246_v5 }
  0xd3   :  { %v2174_v4 = vpack.c.bf16 %v700_v2, %v698_v33 }
  0xd4   :  { %v147_v57 = vmax.f32 %v136_v54, 0.0 }
  0xd5   :  { %728 = vmatpush.bf16.msra.mxu2 %v2174_v4  ;;  %800 = vmatpush.bf16.msrb.mxu3 %v2174_v4 }
  0xd6   :  { %v168_v61 = vpack.c.bf16 %v147_v57, %v147_v57  ;;  %v326_v17 = vpop.f32.mrf.mxu3 }
  0xd7   :  { %v327_v19 = vadd.f32 %v2139_v10, %v326_v17 }
  0xd9   :  { %v137_v58 = vpop.f32.mrf.mxu0  ;;  %729 = vmatpush.bf16.msra.mxu2 %v2195_v18  ;;  %801 = vmatpush.bf16.msrb.mxu3 %v2195_v18  ;;  %v336_v21 = vmax.f32 %v327_v19, 0.0 }
  0xe0   :  { %1618 = vmatmul.msk.bf16.gmra.mxu1 %vm183_vm4, %v168_v61  ;;  %1623 = vmatmul.msk.bf16.gmra.mxu2 %vm183_vm4, %v168_v61 }
  0xe1   :  { %1637 = vmatmul.msk.bf16.gmra.mxu0 %vm449_vm3, %v426_v1 }
  0xf0   :  { %1619 = vmatmul.msk.bf16.vlgmr.msrb.gmra.mxu1 %vm183_vm4, %v2089_v45  ;;  %1640 = vmatmul.msk.bf16.vlgmr.msrb.gmra.mxu2 %vm449_vm3, %v425_v42  ;;  %v325_v45 = vadd.f32 %v2139_v10, %v324_v9  ;;  %v701_v10 = vld [vmem:[%s2704_s13 + $0x58] sm:$0xff] }
  0xf1   :  { %603 = vmatpush.bf16.msrb.mxu1 %v1984_v46  ;;  %1638 = vmatmul.msk.bf16.gmra.mxu0 %vm449_vm3, %v427_v13  ;;  %v397_v46 = vld [vmem:[%s2701_s6] sm:$0x1]  ;;  %v2259_v32 = vpack.c.bf16 %v701_v10, %v699_v52 }
  0xf2   :  { %v335_v20 = vmax.f32 %v325_v45, 0.0  ;;  %v592_v43 = vmax.f32 %v397_v46, 0.0 }
  0xf3   :  { %741 = vmatpush.bf16.msra.mxu0 %v2259_v32 }
  0xf4   :  { %v428_v22 = vpack.c.bf16 %v336_v21, %v335_v20  ;;  %v593_v23 = vpack.c.bf16 %v592_v43, %v592_v43 }
  0xf5   :  { %604 = vmatpush.bf16.msrb.mxu1 %v1996_v50  ;;  %v692_v50 = vld [vmem:[%s2704_s13 + $0x10] sm:$0xff] }
  0xf6   :  { %v2215_v25 = vpack.c.bf16 %v692_v50, %v690_v24 }
  0xf7   :  { %742 = vmatpush.bf16.msra.mxu0 %v2277_v39 }
  0xf8   :  { %730 = vmatpush.bf16.msra.mxu2 %v2215_v25  ;;  %802 = vmatpush.bf16.msrb.mxu3 %v2215_v25 }
  0xfb   :  { %743 = vmatpush.bf16.msra.mxu0 %v2287_v44 }
  0xfc   :  { %871 = vmatpush.bf16.msrb.mxu2 %v2155_v51  ;;  %943 = vmatpush.bf16.msra.mxu3 %v2155_v51 }
 0x100   :  { %1639 = vmatmul.msk.bf16.vlgmr.msra.gmra.mxu1 %vm449_vm3, %v428_v22  ;;  %1641 = vmatmul.msk.bf16.gmra.mxu2 %vm449_vm3, %v426_v1 }
 0x101   :  { %645 = vmatpush.bf16.msra.mxu1 %v2073_v30  ;;  %1645 = vmatmul.msk.bf16.vlgmr.msrb.gmra.mxu0 %vm449_vm3, %v593_v23 }
 0x102   :  { %872 = vmatpush.bf16.msrb.mxu2 %v2174_v4  ;;  %944 = vmatpush.bf16.msra.mxu3 %v2174_v4 }
 0x103   :  { %884 = vmatpush.bf16.msrb.mxu0 %v2246_v5 }
 0x105   :  { %646 = vmatpush.bf16.msra.mxu1 %v2121_v16  ;;  %v2238_v16 = vld [vmem:[%s2705_s12] sm:$0x3] }
 0x106   :  { %873 = vmatpush.bf16.msrb.mxu2 %v2195_v18  ;;  %945 = vmatpush.bf16.msra.mxu3 %v2195_v18  ;;  %v2249_v29 = vperm.slane %v2238_v16, 0 }
 0x107   :  { %885 = vmatpush.bf16.msrb.mxu0 %v2259_v32 }
 0x10a   :  { %874 = vmatpush.bf16.msrb.mxu2 %v2215_v25  ;;  %946 = vmatpush.bf16.msra.mxu3 %v2215_v25 }
 0x10b   :  { %886 = vmatpush.bf16.msrb.mxu0 %v2277_v39 }
 0x10e   :  { %v2227_v30 = vpop.f32.mrf.mxu0 }
 0x10f   :  { %887 = vmatpush.bf16.msrb.mxu0 %v2287_v44 }
 0x110   :  { %1642 = vmatmul.msk.bf16.gmra.mxu2 %vm449_vm3, %v427_v13  ;;  %1644 = vmatmul.msk.bf16.vlgmr.msrb.gmra.mxu1 %vm449_vm3, %v593_v23 }
 0x111   :  { %812 = vmatpush.bf16.msrb.mxu1 %v2246_v5  ;;  %744 = vmatmul.bf16.vlgmr.msra.gmra.mxu0 %v1761_v0 }
 0x113   :  { %1028 = vmatpush.bf16.msra.mxu0 %v2246_v5 }
 0x114   :  { %v471_v35 = vpop.f32.mrf.mxu3 }
 0x115   :  { %813 = vmatpush.bf16.msrb.mxu1 %v2259_v32 }
 0x116   :  { %v2233_v26 = vpop.f32.mrf.mxu0 }
 0x117   :  { %1029 = vmatpush.bf16.msra.mxu0 %v2259_v32 }
 0x119   :  { %814 = vmatpush.bf16.msrb.mxu1 %v2277_v39 }
 0x11b   :  { %1030 = vmatpush.bf16.msra.mxu0 %v2277_v39 }
 0x11c   :  { %v473_v48 = vpop.f32.mrf.mxu3 }
 0x11d   :  { %v208_v31 = vpop.f32.mrf.mxu1  ;;  %815 = vmatpush.bf16.msrb.mxu1 %v2287_v44 }
 0x11e   :  { %v2262_v34 = vadd.f32 %v208_v31, %v2249_v29  ;;  %v2264_v36 = vpop.f32.mrf.mxu0 }
 0x11f   :  { %1031 = vmatpush.bf16.msra.mxu0 %v2287_v44 }
 0x120   :  { %1643 = vmatmul.msk.bf16.gmra.mxu2 %vm449_vm3, %v428_v22  ;;  %1647 = vmatmul.msk.bf16.vlgmr.msra.gmra.mxu1 %vm449_vm3, %v2177_v6 }
 0x121   :  { %956 = vmatpush.bf16.msra.mxu1 %v2246_v5 }
 0x124   :  { %v476_v54 = vpop.f32.mrf.mxu3 }
 0x125   :  { %v210_v42 = vpop.f32.mrf.mxu1  ;;  %957 = vmatpush.bf16.msra.mxu1 %v2259_v32 }
 0x126   :  { %v2289_v47 = vpop.f32.mrf.mxu0  ;;  %v211_v6 = vadd.f32 %v210_v42, %v2249_v29 }
 0x129   :  { %958 = vmatpush.bf16.msra.mxu1 %v2277_v39 }
 0x12c   :  { %v478_v58 = vpop.f32.mrf.mxu3 }
 0x12d   :  { %v213_v49 = vpop.f32.mrf.mxu1  ;;  %959 = vmatpush.bf16.msra.mxu1 %v2287_v44 }
 0x12e   :  { %v2298_v53 = vpop.f32.mrf.mxu0  ;;  %v214_v14 = vadd.f32 %v213_v49, %v2249_v29  ;;  %v2349_v49 = vperm.slane %v2238_v16, 1 }
 0x130   :  { %731 = vmatmul.bf16.vlgmr.msra.gmra.mxu2 %v1761_v0 }
 0x131   :  { %1015 = vmatpush.bf16.msra.mxu2 %v2155_v51 }
 0x133   :  { %v2304_v55 = vpop.f32.mrf.mxu2 }
 0x134   :  { %v481_v63 = vpop.f32.mrf.mxu3  ;;  %v247_v16 = vadd.f32 %v2304_v55, %v2349_v49 }
 0x135   :  { %v215_v56 = vpop.f32.mrf.mxu1  ;;  %1016 = vmatpush.bf16.msra.mxu2 %v2174_v4 }
 0x136   :  { %v2310_v57 = vpop.f32.mrf.mxu0  ;;  %v216_v46 = vadd.f32 %v215_v56, %v2249_v29 }
 0x139   :  { %1017 = vmatpush.bf16.msra.mxu2 %v2195_v18 }
 0x13b   :  { %v2314_v0 = vpop.f32.mrf.mxu2 }
 0x13c   :  { %v483_v8 = vpop.f32.mrf.mxu3 }
 0x13d   :  { %v218_v59 = vpop.f32.mrf.mxu1  ;;  %1018 = vmatpush.bf16.msra.mxu2 %v2215_v25 }
 0x13e   :  { %v2318_v60 = vpop.f32.mrf.mxu0  ;;  %v219_v28 = vadd.f32 %v218_v59, %v2249_v29 }
 0x143   :  { %v2321_v61 = vpop.f32.mrf.mxu2 }
 0x144   :  { %v486_v45 = vpop.f32.mrf.mxu3 }
 0x145   :  { %v220_v62 = vpop.f32.mrf.mxu1 }
 0x146   :  { %v2323_v1 = vpop.f32.mrf.mxu0  ;;  %v221_v40 = vadd.f32 %v220_v62, %v2249_v29 }
 0x14b   :  { %v2325_v33 = vpop.f32.mrf.mxu2 }
 0x14c   :  { %v488_v24 = vpop.f32.mrf.mxu3 }
 0x14d   :  { %v223_v2 = vpop.f32.mrf.mxu1 }
 0x14e   :  { %v541_v3 = vpop.f32.mrf.mxu0 }
 0x14f   :  { %v542_v7 = vadd.f32 %v541_v3, %v471_v35 }
 0x151   :  { %v2328_v9 = vadd.f32 %v542_v7, %v211_v6  ;;  %v224_v6 = vadd.f32 %v223_v2, %v2249_v29 }
 0x153   :  { %v2330_v11 = vpop.f32.mrf.mxu2 }
 0x154   :  { %v635_v37 = vpop.f32.mrf.mxu3 }
 0x155   :  { %v225_v12 = vpop.f32.mrf.mxu1 }
 0x156   :  { %v543_v13 = vpop.f32.mrf.mxu0 }
 0x157   :  { %v544_v15 = vadd.f32 %v543_v13, %v473_v48 }
 0x159   :  { %v2333_v17 = vadd.f32 %v544_v15, %v214_v14 }
 0x15b   :  { %v2335_v19 = vpop.f32.mrf.mxu2 }
 0x15c   :  { %v637_v56 = vpop.f32.mrf.mxu3 }
 0x15d   :  { %v228_v20 = vpop.f32.mrf.mxu1 }
 0x15e   :  { %v546_v21 = vpop.f32.mrf.mxu0  ;;  %v229_v55 = vadd.f32 %v228_v20, %v2249_v29 }
 0x15f   :  { %v547_v22 = vadd.f32 %v546_v21, %v476_v54 }
 0x161   :  { %v2338_v43 = vadd.f32 %v547_v22, %v216_v46 }
 0x163   :  { %v2340_v23 = vpop.f32.mrf.mxu2 }
 0x165   :  { %v230_v50 = vpop.f32.mrf.mxu1 }
 0x166   :  { %v548_v27 = vpop.f32.mrf.mxu0  ;;  %v249_v50 = vadd.f32 %v2314_v0, %v2349_v49 }
 0x167   :  { %v549_v52 = vadd.f32 %v548_v27, %v478_v58 }
 0x169   :  { %v2343_v10 = vadd.f32 %v549_v52, %v219_v28 }
 0x16b   :  { %v263_v31 = vpop.f32.mrf.mxu2 }
 0x16d   :  { %v241_v35 = vpop.f32.mrf.mxu1 }
 0x16e   :  { %v551_v38 = vpop.f32.mrf.mxu0 }
 0x16f   :  { %v552_v41 = vadd.f32 %v551_v38, %v481_v63  ;;  %v252_v38 = vadd.f32 %v2321_v61, %v2349_v49 }
 0x171   :  { %v2346_v42 = vadd.f32 %v552_v41, %v221_v40 }
 0x173   :  { %v570_v48 = vpop.f32.mrf.mxu2 }
 0x174   :  { %v571_v59 = vadd.f32 %v570_v48, %v2227_v30  ;;  %v226_v30 = vadd.f32 %v225_v12, %v2249_v29 }
 0x175   :  { %v243_v54 = vpop.f32.mrf.mxu1 }
 0x176   :  { %v244_v58 = vadd.f32 %v243_v54, %v2349_v49  ;;  %v553_v3 = vpop.f32.mrf.mxu0 }
 0x177   :  { %v554_v13 = vadd.f32 %v553_v3, %v483_v8 }
 0x178   :  { %v659_v7 = vadd.f32 %v571_v59, %v244_v58 }
 0x179   :  { %v2355_v62 = vadd.f32 %v554_v13, %v224_v6  ;;  %v259_v13 = vadd.f32 %v2335_v19, %v2349_v49 }
 0x17a   :  { %675 = vst.msk [vmem:[#allocation2 + $0x18] sm:$0xff] %vm183_vm4, %v659_v7 }
 0x17b   :  { %v572_v63 = vpop.f32.mrf.mxu2 }
 0x17c   :  { %v573_v14 = vadd.f32 %v572_v63, %v2233_v26 }
 0x17d   :  { %v556_v15 = vpop.f32.mrf.mxu1 }
 0x17e   :  { %v661_v21 = vadd.f32 %v573_v14, %v247_v16  ;;  %v557_v46 = vadd.f32 %v556_v15, %v486_v45  ;;  %v619_v22 = vpop.f32.mrf.mxu0 }
 0x180   :  { %677 = vst.msk [vmem:[#allocation2 + $0x28] sm:$0xff] %vm183_vm4, %v661_v21  ;;  %v2362_v2 = vadd.f32 %v557_v46, %v226_v30 }
 0x183   :  { %v575_v8 = vpop.f32.mrf.mxu2 }
 0x184   :  { %v576_v27 = vadd.f32 %v575_v8, %v2264_v36 }
 0x185   :  { %v558_v28 = vpop.f32.mrf.mxu1 }
 0x186   :  { %v663_v26 = vadd.f32 %v576_v27, %v249_v50  ;;  %v559_v52 = vadd.f32 %v558_v28, %v488_v24  ;;  %v621_v31 = vpop.f32.mrf.mxu0  ;;  %v254_v24 = vadd.f32 %v2325_v33, %v2349_v49 }
 0x188   :  { %679 = vst.msk [vmem:[#allocation2 + $0x38] sm:$0xff] %vm183_vm4, %v663_v26  ;;  %v2369_v12 = vadd.f32 %v559_v52, %v229_v55 }
 0x18b   :  { %v577_v45 = vpop.f32.mrf.mxu2 }
 0x18c   :  { %v578_v40 = vadd.f32 %v577_v45, %v2289_v47  ;;  %v257_v47 = vadd.f32 %v2330_v11, %v2349_v49 }
 0x18d   :  { %v606_v41 = vpop.f32.mrf.mxu1 }
 0x18e   :  { %v665_v0 = vadd.f32 %v578_v40, %v252_v38  ;;  %v636_v48 = vadd.f32 %v635_v37, %v606_v41 }
 0x190   :  { %681 = vst.msk [vmem:[#allocation2 + $0x48] sm:$0xff] %vm183_vm4, %v665_v0  ;;  %v652_v36 = vperm.slane %v636_v48, 0 }
 0x192   :  { %v654_v29 = vadd.f32 %v652_v36, %v2262_v34  ;;  %v242_v34 = vadd.f32 %v241_v35, %v2349_v49  ;;  %v262_v35 = vadd.f32 %v2340_v23, %v2349_v49  ;;  %v2397_v23 = vld [vmem:[%s2706_s14] ss:$0 sm:$0xff]  ;;  %s1762_s14 = smov 64  }
 0x193   :  { %v580_v20 = vpop.f32.mrf.mxu2 }
 0x194   :  { %v581_v54 = vadd.f32 %v580_v20, %v2298_v53 }
 0x195   :  { %v608_v56 = vpop.f32.mrf.mxu1 }
 0x196   :  { %v667_v59 = vadd.f32 %v581_v54, %v254_v24 }
 0x198   :  { %683 = vst.msk [vmem:[#allocation2 + $0x58] sm:$0xff] %vm183_vm4, %v667_v59 }
 0x19b   :  { %v582_v61 = vpop.f32.mrf.mxu2 }
 0x19c   :  { %v583_v37 = vadd.f32 %v582_v61, %v2310_v57  ;;  %v745_v57 = vpop.f32.mrf.mxu0 }
 0x19d   :  { %v648_v58 = vpop.f32.mrf.mxu1  ;;  %v769_v31 = vadd.f32 %v2397_v23, %v745_v57 }
 0x19e   :  { %v669_v3 = vadd.f32 %v583_v37, %v257_v47  ;;  %v649_v6 = vadd.f32 %v648_v58, %v619_v22 }
 0x1a0   :  { %685 = vst.msk [vmem:[#allocation2 + $0x68] sm:$0xff] %vm183_vm4, %v669_v3  ;;  %v653_v33 = vperm.slane %v649_v6, 0 }
 0x1a2   :  { %v655_v7 = vadd.f32 %v653_v33, %v242_v34 }
 0x1a3   :  { %v585_v53 = vpop.f32.mrf.mxu2 }
 0x1a4   :  { %657 = vst.msk [vmem:[#allocation2 + $0x8] sm:$0xff] %vm183_vm4, %v655_v7  ;;  %v586_v63 = vadd.f32 %v585_v53, %v2318_v60  ;;  %v747_v21 = vpop.f32.mrf.mxu0 }
 0x1a5   :  { %v650_v11 = vpop.f32.mrf.mxu1 }
 0x1a6   :  { %v671_v16 = vadd.f32 %v586_v63, %v259_v13 }
 0x1a8   :  { %687 = vst.msk [vmem:[#allocation2 + $0x78] sm:$0xff] %vm183_vm4, %v671_v16 }
 0x1ab   :  { %v587_v14 = vpop.f32.mrf.mxu2  ;;  %v719_v0 = vld [vmem:[#allocation2 + $0x8] sm:$0xff] }
 0x1ac   :  { %v588_v15 = vadd.f32 %v587_v14, %v2323_v1 }
 0x1ae   :  { %v673_v30 = vadd.f32 %v588_v15, %v262_v35 }
 0x1b0   :  { %689 = vst.msk [vmem:[#allocation2 + $0x88] sm:$0xff] %vm183_vm4, %v673_v30 }
 0x1b3   :  { %v732_v19 = vpop.f32.mrf.mxu2 }
 0x1b4   :  { %v749_v46 = vadd.f32 %v732_v19, %v654_v29  ;;  %v787_v19 = vld [vmem:[#allocation2 + $0x18] sm:$0xff] }
 0x1b6   :  { %v1648_v22 = vmul.f32 -1.442695, %v749_v46 }
 0x1b8   :  { %1707 = vpow2.f32 %v1648_v22 }
 0x1bb   :  { %v734_v60 = vpop.f32.mrf.mxu2 }
 0x1be   :  { %v1708_v8 = vpop.eup %1707 }
 0x1bf   :  { %v753_v50 = vadd.f32 1.0, %v1708_v8 }
 0x1c1   :  { %1709 = vrcp.f32 %v753_v50  ;;  %v765_v49 = vand.u32 2147483648, %v753_v50  ;;  %v763_v26 = vand.u32 2147483647, %v753_v50  ;;  %vm759_vm6 = vweird.f32 %v753_v50 }
 0x1c3   :  { %v766_v45 = vor.u32 1.1754944e-38, %v765_v49  ;;  %vm764_vm8 = vcmp.eq.f32.partialorder %v763_v26, 8.507059e+37 }
 0x1c7   :  { %v1710_v27 = vpop.eup %1709 }
 0x1c8   :  { %v755_v28 = vmul.f32 %v1710_v27, %v753_v50  ;;  %vm760_vm5 = vweird.f32 %v1710_v27 }
 0x1c9   :  { %vm761_vm7 = vmor %vm759_vm6, %vm760_vm5 }
 0x1ca   :  { %v756_v1 = vsub.f32 1.0, %v755_v28 }
 0x1cc   :  { %v757_v55 = vmul.f32 %v1710_v27, %v756_v1 }
 0x1ce   :  { %v758_v52 = vadd.f32 %v1710_v27, %v757_v55 }
 0x1d0   :  { %v762_v38 = vsel %vm761_vm7, %v1710_v27, %v758_v52 }
 0x1d1   :  { %v767_v40 = vsel %vm764_vm8, %v766_v45, %v762_v38 }
 0x1d2   :  { %v770_v41 = vmul.f32 %v769_v31, %v767_v40  ;;  %v773_v29 = vsub.f32 1.0, %v767_v40  ;;  %v779_v24 = vmul.f32 0.0, %v767_v40 }
 0x1d4   :  { %v771_v48 = vadd.f32 %v770_v41, %v719_v0 }
 0x1d6   :  { %1711 = vtanh.f32 %v771_v48 }
 0x1dc   :  { %v1712_v36 = vpop.eup %1711 }
 0x1dd   :  { %775 = vrot.lane.b32.xlu2 %v1712_v36, %s1762_s14 }
 0x237   :  { %v776_v20 = vpop.permute.xlu2 %775 }
 0x238   :  { %v778_v54 = vmul.f32 %v776_v20, %v773_v29 }
 0x23a   :  { %v2401_v56 = vadd.f32 %v779_v24, %v778_v54 }
 0x23c   :  { %v788_v59 = vpack.c.bf16 %v2401_v56, %v2401_v56 }
 0x23e   :  { %790 = vrot.lane.b32.xlu0 %v788_v59, %s1762_s14 }
 0x2b0   :  { %v791_v61 = vpop.permute.xlu0 %790 }
 0x2b1   :  { %1649 = vmatmul.msk.bf16.vlgmr.msrb.gmra.mxu3 %vm183_vm4, %v791_v61  ;;  %1650 = vmatmul.msk.bf16.vlgmr.msrb.gmra.mxu1 %vm183_vm4, %v791_v61 }
 0x2b2   :  { %1087 = vmatpush.bf16.msrb.mxu3 %v2155_v51  ;;  %1100 = vmatpush.bf16.msrb.mxu1 %v2246_v5 }
 0x2b6   :  { %1088 = vmatpush.bf16.msrb.mxu3 %v2174_v4  ;;  %1101 = vmatpush.bf16.msrb.mxu1 %v2259_v32 }
 0x2ba   :  { %1089 = vmatpush.bf16.msrb.mxu3 %v2195_v18  ;;  %1102 = vmatpush.bf16.msrb.mxu1 %v2277_v39 }
 0x2be   :  { %1090 = vmatpush.bf16.msrb.mxu3 %v2215_v25  ;;  %1103 = vmatpush.bf16.msrb.mxu1 %v2287_v44 }
 0x32e   :  { %v817_v47 = vpop.f32.mrf.mxu1 }
 0x334   :  { %v804_v37 = vpop.f32.mrf.mxu3 }
 0x335   :  { %v821_v58 = vadd.f32 %v804_v37, %v2328_v9  ;;  %v841_v9 = vadd.f32 %v2397_v23, %v817_v47 }
 0x336   :  { %v819_v3 = vpop.f32.mrf.mxu1 }
 0x337   :  { %v1651_v6 = vmul.f32 -1.442695, %v821_v58  ;;  %v859_v58 = vld [vmem:[#allocation2 + $0x28] sm:$0xff] }
 0x339   :  { %1713 = vpow2.f32 %v1651_v6 }
 0x33c   :  { %v806_v34 = vpop.f32.mrf.mxu3 }
 0x33f   :  { %v1714_v33 = vpop.eup %1713 }
 0x340   :  { %v825_v7 = vadd.f32 1.0, %v1714_v33 }
 0x342   :  { %1715 = vrcp.f32 %v825_v7  ;;  %v837_v11 = vand.u32 2147483648, %v825_v7  ;;  %v835_v57 = vand.u32 2147483647, %v825_v7  ;;  %vm831_vm10 = vweird.f32 %v825_v7 }
 0x344   :  { %v838_v35 = vor.u32 1.1754944e-38, %v837_v11  ;;  %vm836_vm12 = vcmp.eq.f32.partialorder %v835_v57, 8.507059e+37 }
 0x348   :  { %v1716_v53 = vpop.eup %1715 }
 0x349   :  { %v827_v13 = vmul.f32 %v1716_v53, %v825_v7  ;;  %vm832_vm9 = vweird.f32 %v1716_v53 }
 0x34a   :  { %vm833_vm11 = vmor %vm831_vm10, %vm832_vm9 }
 0x34b   :  { %v828_v63 = vsub.f32 1.0, %v827_v13 }
 0x34d   :  { %v829_v16 = vmul.f32 %v1716_v53, %v828_v63 }
 0x34f   :  { %v830_v14 = vadd.f32 %v1716_v53, %v829_v16 }
 0x351   :  { %v834_v15 = vsel %vm833_vm11, %v1716_v53, %v830_v14 }
 0x352   :  { %v839_v30 = vsel %vm836_vm12, %v838_v35, %v834_v15 }
 0x353   :  { %v842_v21 = vmul.f32 %v841_v9, %v839_v30  ;;  %v845_v60 = vsub.f32 1.0, %v839_v30  ;;  %v851_v50 = vmul.f32 %v839_v30, %v2401_v56 }
 0x355   :  { %v843_v46 = vadd.f32 %v842_v21, %v787_v19 }
 0x357   :  { %1717 = vtanh.f32 %v843_v46 }
 0x35d   :  { %v1718_v22 = vpop.eup %1717 }
 0x35e   :  { %847 = vrot.lane.b32.xlu1 %v1718_v22, %s1762_s14 }
 0x3d0   :  { %v848_v8 = vpop.permute.xlu1 %847 }
 0x3d1   :  { %v850_v27 = vmul.f32 %v848_v8, %v845_v60 }
 0x3d3   :  { %v2420_v28 = vadd.f32 %v851_v50, %v850_v27 }
 0x3d5   :  { %v860_v1 = vpack.c.bf16 %v2420_v28, %v2420_v28 }
 0x3d7   :  { %862 = vrot.lane.b32.xlu2 %v860_v1, %s1762_s14 }
 0x431   :  { %v863_v49 = vpop.permute.xlu2 %862 }
 0x432   :  { %1652 = vmatmul.msk.bf16.vlgmr.msrb.gmra.mxu2 %vm183_vm4, %v863_v49  ;;  %1653 = vmatmul.msk.bf16.vlgmr.msrb.gmra.mxu0 %vm183_vm4, %v863_v49 }
 0x433   :  { %1159 = vmatpush.bf16.msrb.mxu2 %v2155_v51  ;;  %1172 = vmatpush.bf16.msrb.mxu0 %v2246_v5 }
 0x437   :  { %1160 = vmatpush.bf16.msrb.mxu2 %v2174_v4  ;;  %1173 = vmatpush.bf16.msrb.mxu0 %v2259_v32 }
 0x43b   :  { %1161 = vmatpush.bf16.msrb.mxu2 %v2195_v18  ;;  %1174 = vmatpush.bf16.msrb.mxu0 %v2277_v39 }
 0x43f   :  { %1162 = vmatpush.bf16.msrb.mxu2 %v2215_v25  ;;  %1175 = vmatpush.bf16.msrb.mxu0 %v2287_v44 }
 0x4af   :  { %v889_v55 = vpop.f32.mrf.mxu0 }
 0x4b5   :  { %v876_v26 = vpop.f32.mrf.mxu2 }
 0x4b6   :  { %v893_v52 = vadd.f32 %v876_v26, %v2333_v17  ;;  %v913_v17 = vadd.f32 %v2397_v23, %v889_v55 }
 0x4b7   :  { %v891_v31 = vpop.f32.mrf.mxu0 }
 0x4b8   :  { %v1654_v45 = vmul.f32 -1.442695, %v893_v52  ;;  %v931_v52 = vld [vmem:[#allocation2 + $0x38] sm:$0xff] }
 0x4ba   :  { %1719 = vpow2.f32 %v1654_v45 }
 0x4bd   :  { %v878_v38 = vpop.f32.mrf.mxu2 }
 0x4c0   :  { %v1720_v40 = vpop.eup %1719 }
 0x4c1   :  { %v897_v41 = vadd.f32 1.0, %v1720_v40 }
 0x4c3   :  { %1721 = vrcp.f32 %v897_v41  ;;  %v909_v29 = vand.u32 2147483648, %v897_v41  ;;  %v907_v24 = vand.u32 2147483647, %v897_v41  ;;  %vm903_vm14 = vweird.f32 %v897_v41 }
 0x4c5   :  { %v910_v59 = vor.u32 1.1754944e-38, %v909_v29  ;;  %vm908_vm0 = vcmp.eq.f32.partialorder %v907_v24, 8.507059e+37 }
 0x4c9   :  { %v1722_v0 = vpop.eup %1721 }
 0x4ca   :  { %v899_v48 = vmul.f32 %v1722_v0, %v897_v41  ;;  %vm904_vm13 = vweird.f32 %v1722_v0 }
 0x4cb   :  { %vm905_vm15 = vmor %vm903_vm14, %vm904_vm13 }
 0x4cc   :  { %v900_v36 = vsub.f32 1.0, %v899_v48 }
 0x4ce   :  { %v901_v20 = vmul.f32 %v1722_v0, %v900_v36 }
 0x4d0   :  { %v902_v54 = vadd.f32 %v1722_v0, %v901_v20 }
 0x4d2   :  { %v906_v61 = vsel %vm905_vm15, %v1722_v0, %v902_v54 }
 0x4d3   :  { %v911_v47 = vsel %vm908_vm0, %v910_v59, %v906_v61 }
 0x4d4   :  { %v914_v37 = vmul.f32 %v913_v17, %v911_v47  ;;  %v917_v34 = vsub.f32 1.0, %v911_v47  ;;  %v923_v7 = vmul.f32 %v911_v47, %v2420_v28 }
 0x4d6   :  { %v915_v3 = vadd.f32 %v914_v37, %v859_v58 }
 0x4d8   :  { %1723 = vtanh.f32 %v915_v3 }
 0x4de   :  { %v1724_v6 = vpop.eup %1723 }
 0x4df   :  { %919 = vrot.lane.b32.xlu0 %v1724_v6, %s1762_s14 }
 0x551   :  { %v920_v33 = vpop.permute.xlu0 %919 }
 0x552   :  { %v922_v53 = vmul.f32 %v920_v33, %v917_v34  ;;  %v1003_v34 = vld [vmem:[#allocation2 + $0x48] sm:$0xff] }
 0x554   :  { %v2439_v13 = vadd.f32 %v923_v7, %v922_v53 }
 0x556   :  { %v932_v63 = vpack.c.bf16 %v2439_v13, %v2439_v13 }
 0x558   :  { %934 = vrot.lane.b32.xlu1 %v932_v63, %s1762_s14 }
 0x5ca   :  { %v935_v11 = vpop.permute.xlu1 %934 }
 0x5cb   :  { %1655 = vmatmul.msk.bf16.vlgmr.msra.gmra.mxu3 %vm183_vm4, %v935_v11  ;;  %1656 = vmatmul.msk.bf16.vlgmr.msra.gmra.mxu1 %vm183_vm4, %v935_v11 }
 0x5cc   :  { %1231 = vmatpush.bf16.msra.mxu3 %v2155_v51  ;;  %1244 = vmatpush.bf16.msra.mxu1 %v2246_v5 }
 0x5d0   :  { %1232 = vmatpush.bf16.msra.mxu3 %v2174_v4  ;;  %1245 = vmatpush.bf16.msra.mxu1 %v2259_v32 }
 0x5d4   :  { %1233 = vmatpush.bf16.msra.mxu3 %v2195_v18  ;;  %1246 = vmatpush.bf16.msra.mxu1 %v2277_v39 }
 0x5d8   :  { %1234 = vmatpush.bf16.msra.mxu3 %v2215_v25  ;;  %1247 = vmatpush.bf16.msra.mxu1 %v2287_v44 }
 0x648   :  { %v961_v16 = vpop.f32.mrf.mxu1 }
 0x64e   :  { %v948_v57 = vpop.f32.mrf.mxu3 }
 0x64f   :  { %v965_v14 = vadd.f32 %v948_v57, %v2338_v43  ;;  %v985_v43 = vadd.f32 %v2397_v23, %v961_v16 }
 0x650   :  { %v963_v35 = vpop.f32.mrf.mxu1 }
 0x651   :  { %v1657_v9 = vmul.f32 -1.442695, %v965_v14 }
 0x653   :  { %1725 = vpow2.f32 %v1657_v9 }
 0x656   :  { %v950_v15 = vpop.f32.mrf.mxu3 }
 0x659   :  { %v1726_v30 = vpop.eup %1725 }
 0x65a   :  { %v969_v21 = vadd.f32 1.0, %v1726_v30 }
 0x65c   :  { %1727 = vrcp.f32 %v969_v21  ;;  %v981_v60 = vand.u32 2147483648, %v969_v21  ;;  %v979_v50 = vand.u32 2147483647, %v969_v21  ;;  %vm975_vm2 = vweird.f32 %v969_v21 }
 0x65e   :  { %v982_v1 = vor.u32 1.1754944e-38, %v981_v60  ;;  %vm980_vm5 = vcmp.eq.f32.partialorder %v979_v50, 8.507059e+37 }
 0x662   :  { %v1728_v19 = vpop.eup %1727 }
 0x663   :  { %v971_v46 = vmul.f32 %v1728_v19, %v969_v21  ;;  %vm976_vm1 = vweird.f32 %v1728_v19 }
 0x664   :  { %vm977_vm3 = vmor %vm975_vm2, %vm976_vm1 }
 0x665   :  { %v972_v22 = vsub.f32 1.0, %v971_v46 }
 0x667   :  { %v973_v8 = vmul.f32 %v1728_v19, %v972_v22 }
 0x669   :  { %v974_v27 = vadd.f32 %v1728_v19, %v973_v8 }
 0x66b   :  { %v978_v49 = vsel %vm977_vm3, %v1728_v19, %v974_v27 }
 0x66c   :  { %v983_v55 = vsel %vm980_vm5, %v982_v1, %v978_v49 }
 0x66d   :  { %v986_v26 = vmul.f32 %v985_v43, %v983_v55  ;;  %v989_v38 = vsub.f32 1.0, %v983_v55  ;;  %v995_v41 = vmul.f32 %v983_v55, %v2439_v13 }
 0x66f   :  { %v987_v31 = vadd.f32 %v986_v26, %v931_v52 }
 0x671   :  { %1729 = vtanh.f32 %v987_v31 }
 0x677   :  { %v1730_v45 = vpop.eup %1729 }
 0x678   :  { %991 = vrot.lane.b32.xlu2 %v1730_v45, %s1762_s14 }
 0x6d2   :  { %v992_v40 = vpop.permute.xlu2 %991 }
 0x6d3   :  { %v994_v0 = vmul.f32 %v992_v40, %v989_v38  ;;  %v1075_v38 = vld [vmem:[#allocation2 + $0x58] sm:$0xff] }
 0x6d5   :  { %v2458_v48 = vadd.f32 %v995_v41, %v994_v0 }
 0x6d7   :  { %v1004_v36 = vpack.c.bf16 %v2458_v48, %v2458_v48 }
 0x6d9   :  { %1006 = vrot.lane.b32.xlu0 %v1004_v36, %s1762_s14 }
 0x74b   :  { %v1007_v29 = vpop.permute.xlu0 %1006 }
 0x74c   :  { %1658 = vmatmul.msk.bf16.vlgmr.msra.gmra.mxu2 %vm183_vm4, %v1007_v29  ;;  %1659 = vmatmul.msk.bf16.vlgmr.msra.gmra.mxu0 %vm183_vm4, %v1007_v29 }
 0x74d   :  { %1303 = vmatpush.bf16.msra.mxu2 %v2155_v51  ;;  %1316 = vmatpush.bf16.msra.mxu0 %v2246_v5 }
 0x751   :  { %1304 = vmatpush.bf16.msra.mxu2 %v2174_v4  ;;  %1317 = vmatpush.bf16.msra.mxu0 %v2259_v32 }
 0x755   :  { %1305 = vmatpush.bf16.msra.mxu2 %v2195_v18  ;;  %1318 = vmatpush.bf16.msra.mxu0 %v2277_v39 }
 0x759   :  { %1306 = vmatpush.bf16.msra.mxu2 %v2215_v25  ;;  %1319 = vmatpush.bf16.msra.mxu0 %v2287_v44 }
 0x7c9   :  { %v1033_v20 = vpop.f32.mrf.mxu0 }
 0x7cf   :  { %v1020_v24 = vpop.f32.mrf.mxu2 }
 0x7d0   :  { %v1037_v54 = vadd.f32 %v1020_v24, %v2343_v10  ;;  %v1057_v10 = vadd.f32 %v2397_v23, %v1033_v20 }
 0x7d1   :  { %v1035_v59 = vpop.f32.mrf.mxu0 }
 0x7d2   :  { %v1660_v51 = vmul.f32 -1.442695, %v1037_v54 }
 0x7d4   :  { %1731 = vpow2.f32 %v1660_v51 }
 0x7d7   :  { %v1022_v5 = vpop.f32.mrf.mxu2 }
 0x7da   :  { %v1732_v17 = vpop.eup %1731 }
 0x7db   :  { %v1041_v4 = vadd.f32 1.0, %v1732_v17 }
 0x7dd   :  { %1733 = vrcp.f32 %v1041_v4  ;;  %v1053_v47 = vand.u32 2147483648, %v1041_v4  ;;  %v1051_v25 = vand.u32 2147483647, %v1041_v4  ;;  %vm1047_vm7 = vweird.f32 %v1041_v4 }
 0x7df   :  { %v1054_v44 = vor.u32 1.1754944e-38, %v1053_v47  ;;  %vm1052_vm9 = vcmp.eq.f32.partialorder %v1051_v25, 8.507059e+37 }
 0x7e3   :  { %v1734_v32 = vpop.eup %1733 }
 0x7e4   :  { %v1043_v61 = vmul.f32 %v1734_v32, %v1041_v4  ;;  %vm1048_vm6 = vweird.f32 %v1734_v32 }
 0x7e5   :  { %vm1049_vm8 = vmor %vm1047_vm7, %vm1048_vm6 }
 0x7e6   :  { %v1044_v18 = vsub.f32 1.0, %v1043_v61 }
 0x7e8   :  { %v1045_v39 = vmul.f32 %v1734_v32, %v1044_v18 }
 0x7ea   :  { %v1046_v37 = vadd.f32 %v1734_v32, %v1045_v39 }
 0x7ec   :  { %v1050_v58 = vsel %vm1049_vm8, %v1734_v32, %v1046_v37 }
 0x7ed   :  { %v1055_v3 = vsel %vm1052_vm9, %v1054_v44, %v1050_v58 }
 0x7ee   :  { %v1058_v6 = vmul.f32 %v1057_v10, %v1055_v3  ;;  %v1061_v53 = vsub.f32 1.0, %v1055_v3  ;;  %v1067_v11 = vmul.f32 %v1055_v3, %v2458_v48 }
 0x7f0   :  { %v1059_v33 = vadd.f32 %v1058_v6, %v1003_v34 }
 0x7f2   :  { %1735 = vtanh.f32 %v1059_v33 }
 0x7f8   :  { %v1736_v7 = vpop.eup %1735 }
 0x7f9   :  { %1063 = vrot.lane.b32.xlu1 %v1736_v7, %s1762_s14 }
 0x86b   :  { %v1064_v63 = vpop.permute.xlu1 %1063 }
 0x86c   :  { %v1066_v16 = vmul.f32 %v1064_v63, %v1061_v53  ;;  %v1147_v53 = vld [vmem:[#allocation2 + $0x68] sm:$0xff] }
 0x86e   :  { %v2477_v57 = vadd.f32 %v1067_v11, %v1066_v16 }
 0x870   :  { %v1076_v14 = vpack.c.bf16 %v2477_v57, %v2477_v57 }
 0x872   :  { %1078 = vrot.lane.b32.xlu2 %v1076_v14, %s1762_s14 }
 0x8cc   :  { %v1079_v35 = vpop.permute.xlu2 %1078 }
 0x8cd   :  { %1661 = vmatmul.msk.bf16.vlgmr.msrb.gmra.mxu3 %vm183_vm4, %v1079_v35  ;;  %1662 = vmatmul.msk.bf16.vlgmr.msrb.gmra.mxu1 %vm183_vm4, %v1079_v35 }
 0x94a   :  { %v1105_v9 = vpop.f32.mrf.mxu1 }
 0x950   :  { %v1092_v15 = vpop.f32.mrf.mxu3 }
 0x951   :  { %v1109_v30 = vadd.f32 %v1092_v15, %v2346_v42  ;;  %v1129_v42 = vadd.f32 %v2397_v23, %v1105_v9 }
 0x952   :  { %v1107_v21 = vpop.f32.mrf.mxu1 }
 0x953   :  { %v1663_v19 = vmul.f32 -1.442695, %v1109_v30 }
 0x955   :  { %1737 = vpow2.f32 %v1663_v19 }
 0x958   :  { %v1094_v46 = vpop.f32.mrf.mxu3 }
 0x95b   :  { %v1738_v22 = vpop.eup %1737 }
 0x95c   :  { %v1113_v60 = vadd.f32 1.0, %v1738_v22 }
 0x95e   :  { %1739 = vrcp.f32 %v1113_v60  ;;  %v1125_v1 = vand.u32 2147483648, %v1113_v60  ;;  %v1123_v49 = vand.u32 2147483647, %v1113_v60  ;;  %vm1119_vm11 = vweird.f32 %v1113_v60 }
 0x960   :  { %v1126_v26 = vor.u32 1.1754944e-38, %v1125_v1  ;;  %vm1124_vm13 = vcmp.eq.f32.partialorder %v1123_v49, 8.507059e+37 }
 0x964   :  { %v1740_v8 = vpop.eup %1739 }
 0x965   :  { %v1115_v50 = vmul.f32 %v1740_v8, %v1113_v60  ;;  %vm1120_vm10 = vweird.f32 %v1740_v8 }
 0x966   :  { %vm1121_vm12 = vmor %vm1119_vm11, %vm1120_vm10 }
 0x967   :  { %v1116_v27 = vsub.f32 1.0, %v1115_v50 }
 0x969   :  { %v1117_v43 = vmul.f32 %v1740_v8, %v1116_v27 }
 0x96b   :  { %v1118_v55 = vadd.f32 %v1740_v8, %v1117_v43 }
 0x96d   :  { %v1122_v52 = vsel %vm1121_vm12, %v1740_v8, %v1118_v55 }
 0x96e   :  { %v1127_v31 = vsel %vm1124_vm13, %v1126_v26, %v1122_v52 }
 0x96f   :  { %v1130_v45 = vmul.f32 %v1129_v42, %v1127_v31  ;;  %v1133_v0 = vsub.f32 1.0, %v1127_v31  ;;  %v1139_v29 = vmul.f32 %v1127_v31, %v2477_v57 }
 0x971   :  { %v1131_v40 = vadd.f32 %v1130_v45, %v1075_v38 }
 0x973   :  { %1741 = vtanh.f32 %v1131_v40 }
 0x979   :  { %v1742_v41 = vpop.eup %1741 }
 0x97a   :  { %1135 = vrot.lane.b32.xlu0 %v1742_v41, %s1762_s14 }
 0x9ec   :  { %v1136_v36 = vpop.permute.xlu0 %1135 }
 0x9ed   :  { %v1138_v20 = vmul.f32 %v1136_v36, %v1133_v0  ;;  %v1219_v0 = vld [vmem:[#allocation2 + $0x78] sm:$0xff] }
 0x9ef   :  { %v2488_v24 = vadd.f32 %v1139_v29, %v1138_v20  ;;  %v1377_v20 = vld [vmem:[%s2707_s15 + $0x30] sm:$0xff] }
 0x9f1   :  { %v1148_v54 = vpack.c.bf16 %v2488_v24, %v2488_v24 }
 0x9f3   :  { %1150 = vrot.lane.b32.xlu1 %v1148_v54, %s1762_s14  ;;  %v1378_v54 = vld [vmem:[%s2707_s15 + $0x38] sm:$0xff] }
 0xa65   :  { %v1151_v59 = vpop.permute.xlu1 %1150 }
 0xa66   :  { %1664 = vmatmul.msk.bf16.vlgmr.msrb.gmra.mxu2 %vm183_vm4, %v1151_v59  ;;  %1665 = vmatmul.msk.bf16.vlgmr.msrb.gmra.mxu0 %vm183_vm4, %v1151_v59  ;;  %v1387_v59 = vpack.c.bf16 %v1378_v54, %v1377_v20 }
 0xa68   :  { %1411 = vmatpush.bf16.msrb.mxu3 %v1387_v59 }
 0xae3   :  { %v1177_v51 = vpop.f32.mrf.mxu0 }
 0xae9   :  { %v1164_v5 = vpop.f32.mrf.mxu2 }
 0xaea   :  { %v1181_v17 = vadd.f32 %v1164_v5, %v2355_v62  ;;  %v1201_v62 = vadd.f32 %v2397_v23, %v1177_v51  ;;  %v1373_v5 = vld [vmem:[%s2707_s15 + $0x10] sm:$0xff] }
 0xaeb   :  { %v1179_v4 = vpop.f32.mrf.mxu0 }
 0xaec   :  { %v1666_v32 = vmul.f32 -1.442695, %v1181_v17  ;;  %v1374_v17 = vld [vmem:[%s2707_s15 + $0x18] sm:$0xff] }
 0xaed   :  { %v1385_v4 = vpack.c.bf16 %v1374_v17, %v1373_v5 }
 0xaee   :  { %1743 = vpow2.f32 %v1666_v32  ;;  %v1371_v32 = vld [vmem:[%s2707_s15] sm:$0xff] }
 0xaf1   :  { %v1166_v61 = vpop.f32.mrf.mxu2 }
 0xaf2   :  { %v1372_v61 = vld [vmem:[%s2707_s15 + $0x8] sm:$0xff] }
 0xaf4   :  { %v1744_v18 = vpop.eup %1743 }
 0xaf5   :  { %v1185_v47 = vadd.f32 1.0, %v1744_v18  ;;  %v1384_v18 = vpack.c.bf16 %v1372_v61, %v1371_v32 }
 0xaf7   :  { %1745 = vrcp.f32 %v1185_v47  ;;  %v1197_v44 = vand.u32 2147483648, %v1185_v47  ;;  %v1195_v58 = vand.u32 2147483647, %v1185_v47  ;;  %vm1191_vm15 = vweird.f32 %v1185_v47 }
 0xaf9   :  { %v1198_v6 = vor.u32 1.1754944e-38, %v1197_v44  ;;  %vm1196_vm1 = vcmp.eq.f32.partialorder %v1195_v58, 8.507059e+37 }
 0xafd   :  { %v1746_v39 = vpop.eup %1745 }
 0xafe   :  { %v1187_v25 = vmul.f32 %v1746_v39, %v1185_v47  ;;  %vm1192_vm14 = vweird.f32 %v1746_v39 }
 0xaff   :  { %vm1193_vm0 = vmor %vm1191_vm15, %vm1192_vm14 }
 0xb00   :  { %v1188_v37 = vsub.f32 1.0, %v1187_v25 }
 0xb02   :  { %v1189_v10 = vmul.f32 %v1746_v39, %v1188_v37 }
 0xb04   :  { %v1190_v3 = vadd.f32 %v1746_v39, %v1189_v10 }
 0xb06   :  { %v1194_v34 = vsel %vm1193_vm0, %v1746_v39, %v1190_v3 }
 0xb07   :  { %v1199_v33 = vsel %vm1196_vm1, %v1198_v6, %v1194_v34 }
 0xb08   :  { %v1202_v7 = vmul.f32 %v1201_v62, %v1199_v33  ;;  %v1205_v16 = vsub.f32 1.0, %v1199_v33  ;;  %v1211_v35 = vmul.f32 %v1199_v33, %v2488_v24 }
 0xb0a   :  { %v1203_v63 = vadd.f32 %v1202_v7, %v1147_v53 }
 0xb0c   :  { %1747 = vtanh.f32 %v1203_v63 }
 0xb12   :  { %v1748_v11 = vpop.eup %1747 }
 0xb13   :  { %1207 = vrot.lane.b32.xlu2 %v1748_v11, %s1762_s14 }
 0xb6d   :  { %v1208_v14 = vpop.permute.xlu2 %1207 }
 0xb6e   :  { %v1210_v9 = vmul.f32 %v1208_v14, %v1205_v16  ;;  %v1455_v16 = vld [vmem:[%s2709_s17 + $0x30] sm:$0xff]  ;;  %v1456_v14 = vld [vmem:[%s2709_s17 + $0x38] sm:$0xff] }
 0xb70   :  { %v2499_v15 = vadd.f32 %v1211_v35, %v1210_v9  ;;  %v1465_v35 = vpack.c.bf16 %v1456_v14, %v1455_v16  ;;  %v1453_v9 = vld [vmem:[%s2709_s17 + $0x20] sm:$0xff]  ;;  %v1529_v16 = vld [vmem:[%s2711_s19 + $0x10] sm:$0xff]  ;;  %v1530_v14 = vld [vmem:[%s2711_s19 + $0x18] sm:$0xff] }
 0xb72   :  { %v1220_v30 = vpack.c.bf16 %v2499_v15, %v2499_v15  ;;  %1489 = vmatpush.bf16.msrb.mxu1 %v1465_v35  ;;  %v1541_v35 = vpack.c.bf16 %v1530_v14, %v1529_v16 }
 0xb74   :  { %1222 = vrot.lane.b32.xlu0 %v1220_v30, %s1762_s14 }
 0xb7c   :  { %782 = vrot.lane.b32.xlu0 %v2401_v56, %s1762_s14 }
 0xb84   :  { %998 = vrot.lane.b32.xlu0 %v2458_v48, %s1762_s14 }
 0xbe6   :  { %v1223_v21 = vpop.permute.xlu0 %1222 }
 0xbe7   :  { %1667 = vmatmul.msk.bf16.vlgmr.msra.gmra.mxu3 %vm183_vm4, %v1223_v21  ;;  %1668 = vmatmul.msk.bf16.vlgmr.msra.gmra.mxu1 %vm183_vm4, %v1223_v21 }
 0xbee   :  { %v783_v19 = vpop.permute.xlu0 %782 }
 0xbef   :  { %785 = vst.msk [vmem:[#allocation3] sm:$0xff] %vm183_vm4, %v783_v19  ;;  %v1451_v19 = vld [vmem:[%s2709_s17 + $0x10] sm:$0xff] }
 0xbf6   :  { %v999_v46 = vpop.permute.xlu0 %998  ;;  %v1362_v6 = vld [vmem:[#allocation3] sm:$0xff] }
 0xbf7   :  { %1001 = vst.msk [vmem:[#allocation3 + $0x18] sm:$0xff] %vm183_vm4, %v999_v46  ;;  %v1452_v46 = vld [vmem:[%s2709_s17 + $0x18] sm:$0xff] }
 0xbfe   :  { %v1365_v11 = vld [vmem:[#allocation3 + $0x18] sm:$0xff] }
 0xc64   :  { %v1249_v22 = vpop.f32.mrf.mxu1 }
 0xc6a   :  { %v1236_v60 = vpop.f32.mrf.mxu3 }
 0xc6b   :  { %v1253_v8 = vadd.f32 %v1236_v60, %v2362_v2  ;;  %v1273_v2 = vadd.f32 %v2397_v23, %v1249_v22  ;;  %v1463_v22 = vpack.c.bf16 %v1452_v46, %v1451_v19 }
 0xc6c   :  { %v1251_v50 = vpop.f32.mrf.mxu1 }
 0xc6d   :  { %v1669_v56 = vmul.f32 -1.442695, %v1253_v8  ;;  %v1449_v8 = vld [vmem:[%s2709_s17] sm:$0xff]  ;;  %v1450_v50 = vld [vmem:[%s2709_s17 + $0x8] sm:$0xff] }
 0xc6f   :  { %1749 = vpow2.f32 %v1669_v56  ;;  %v1462_v56 = vpack.c.bf16 %v1450_v50, %v1449_v8 }
 0xc72   :  { %v1238_v27 = vpop.f32.mrf.mxu3 }
 0xc75   :  { %v1750_v48 = vpop.eup %1749 }
 0xc76   :  { %v1257_v1 = vadd.f32 1.0, %v1750_v48 }
 0xc78   :  { %1751 = vrcp.f32 %v1257_v1  ;;  %v1269_v26 = vand.u32 2147483648, %v1257_v1  ;;  %v1267_v52 = vand.u32 2147483647, %v1257_v1  ;;  %vm1263_vm3 = vweird.f32 %v1257_v1 }
 0xc7a   :  { %v1270_v45 = vor.u32 1.1754944e-38, %v1269_v26  ;;  %vm1268_vm6 = vcmp.eq.f32.partialorder %v1267_v52, 8.507059e+37  ;;  %v2596_v26 = vld [vmem:[%s2708_s16] ss:$0 sm:$0xff] }
 0xc7e   :  { %v1752_v43 = vpop.eup %1751 }
 0xc7f   :  { %v1259_v49 = vmul.f32 %v1752_v43, %v1257_v1  ;;  %vm1264_vm2 = vweird.f32 %v1752_v43 }
 0xc80   :  { %vm1265_vm5 = vmor %vm1263_vm3, %vm1264_vm2 }
 0xc81   :  { %v1260_v55 = vsub.f32 1.0, %v1259_v49 }
 0xc83   :  { %v1261_v42 = vmul.f32 %v1752_v43, %v1260_v55 }
 0xc85   :  { %v1262_v31 = vadd.f32 %v1752_v43, %v1261_v42 }
 0xc87   :  { %v1266_v38 = vsel %vm1265_vm5, %v1752_v43, %v1262_v31 }
 0xc88   :  { %v1271_v40 = vsel %vm1268_vm6, %v1270_v45, %v1266_v38 }
 0xc89   :  { %v1274_v41 = vmul.f32 %v1273_v2, %v1271_v40  ;;  %v1277_v47 = vsub.f32 1.0, %v1271_v40  ;;  %v1283_v25 = vmul.f32 %v1271_v40, %v2499_v15 }
 0xc8b   :  { %v1275_v36 = vadd.f32 %v1274_v41, %v1219_v0 }
 0xc8d   :  { %1753 = vtanh.f32 %v1275_v36 }
 0xc93   :  { %v1754_v29 = vpop.eup %1753 }
 0xc94   :  { %1279 = vrot.lane.b32.xlu1 %v1754_v29, %s1762_s14 }
 0xc9c   :  { %854 = vrot.lane.b32.xlu1 %v2420_v28, %s1762_s14  ;;  %v1375_v28 = vld [vmem:[%s2707_s15 + $0x20] sm:$0xff] }
 0xca4   :  { %1070 = vrot.lane.b32.xlu1 %v2477_v57, %s1762_s14  ;;  %v1376_v57 = vld [vmem:[%s2707_s15 + $0x28] sm:$0xff] }
 0xca5   :  { %v1386_v51 = vpack.c.bf16 %v1376_v57, %v1375_v28 }
 0xca7   :  { %1412 = vmatpush.bf16.msrb.mxu3 %v1386_v51 }
 0xcab   :  { %1413 = vmatpush.bf16.msrb.mxu3 %v1385_v4 }
 0xcac   :  { %1214 = vrot.lane.b32.xlu1 %v2499_v15, %s1762_s14  ;;  %v1454_v15 = vld [vmem:[%s2709_s17 + $0x28] sm:$0xff] }
 0xcad   :  { %v1464_v30 = vpack.c.bf16 %v1454_v15, %v1453_v9  ;;  %v1527_v9 = vld [vmem:[%s2711_s19] sm:$0xff]  ;;  %v1528_v15 = vld [vmem:[%s2711_s19 + $0x8] sm:$0xff] }
 0xcaf   :  { %1414 = vmatpush.bf16.msrb.mxu3 %v1384_v18  ;;  %1490 = vmatpush.bf16.msrb.mxu1 %v1464_v30  ;;  %v1540_v30 = vpack.c.bf16 %v1528_v15, %v1527_v9 }
 0xcb3   :  { %1491 = vmatpush.bf16.msrb.mxu1 %v1463_v22 }
 0xcb7   :  { %1492 = vmatpush.bf16.msrb.mxu1 %v1462_v56 }
 0xd06   :  { %v1280_v39 = vpop.permute.xlu1 %1279 }
 0xd07   :  { %v1282_v37 = vmul.f32 %v1280_v39, %v1277_v47  ;;  %v1534_v47 = vld [vmem:[%s2711_s19 + $0x38] sm:$0xff] }
 0xd09   :  { %v2546_v44 = vadd.f32 %v1283_v25, %v1282_v37 }
 0xd0b   :  { %v1292_v10 = vpack.c.bf16 %v2546_v44, %v2546_v44 }
 0xd0d   :  { %1294 = vrot.lane.b32.xlu2 %v1292_v10, %s1762_s14 }
 0xd0e   :  { %v855_v58 = vpop.permute.xlu1 %854 }
 0xd0f   :  { %857 = vst.msk [vmem:[#allocation3 + $0x8] sm:$0xff] %vm183_vm4, %v855_v58 }
 0xd15   :  { %926 = vrot.lane.b32.xlu2 %v2439_v13, %s1762_s14 }
 0xd16   :  { %v1071_v3 = vpop.permute.xlu1 %1070  ;;  %v1363_v62 = vld [vmem:[#allocation3 + $0x8] sm:$0xff] }
 0xd17   :  { %1073 = vst.msk [vmem:[#allocation3 + $0x20] sm:$0xff] %vm183_vm4, %v1071_v3  ;;  %v1379_v34 = vpack.c.bf16 %v1363_v62, %v1362_v6 }
 0xd19   :  { %1673 = vmatmul.msk.bf16.vlgmr.msrb.gmra.mxu3 %vm183_vm4, %v1379_v34 }
 0xd1d   :  { %1142 = vrot.lane.b32.xlu2 %v2488_v24, %s1762_s14 }
 0xd1e   :  { %v1215_v33 = vpop.permute.xlu1 %1214  ;;  %v1366_v27 = vld [vmem:[#allocation3 + $0x20] sm:$0xff] }
 0xd1f   :  { %1217 = vst.msk [vmem:[#allocation3 + $0x30] sm:$0xff] %vm183_vm4, %v1215_v33  ;;  %v1531_v33 = vld [vmem:[%s2711_s19 + $0x20] sm:$0xff] }
 0xd25   :  { %1286 = vrot.lane.b32.xlu2 %v2546_v44, %s1762_s14 }
 0xd26   :  { %v1368_v43 = vld [vmem:[#allocation3 + $0x30] sm:$0xff] }
 0xd67   :  { %v1295_v7 = vpop.permute.xlu2 %1294 }
 0xd68   :  { %1670 = vmatmul.msk.bf16.vlgmr.msra.gmra.mxu2 %vm183_vm4, %v1295_v7  ;;  %1671 = vmatmul.msk.bf16.vlgmr.msra.gmra.mxu0 %vm183_vm4, %v1295_v7  ;;  %v1532_v7 = vld [vmem:[%s2711_s19 + $0x28] sm:$0xff] }
 0xd6f   :  { %v927_v13 = vpop.permute.xlu2 %926 }
 0xd70   :  { %929 = vst.msk [vmem:[#allocation3 + $0x10] sm:$0xff] %vm183_vm4, %v927_v13 }
 0xd77   :  { %v1143_v53 = vpop.permute.xlu2 %1142  ;;  %v1364_v63 = vld [vmem:[#allocation3 + $0x10] sm:$0xff] }
 0xd78   :  { %1145 = vst.msk [vmem:[#allocation3 + $0x28] sm:$0xff] %vm183_vm4, %v1143_v53  ;;  %v1380_v24 = vpack.c.bf16 %v1365_v11, %v1364_v63  ;;  %v1542_v63 = vpack.c.bf16 %v1532_v7, %v1531_v33 }
 0xd7a   :  { %1674 = vmatmul.msk.bf16.gmra.mxu3 %vm183_vm4, %v1380_v24 }
 0xd7f   :  { %v1287_v21 = vpop.permute.xlu2 %1286  ;;  %v1367_v60 = vld [vmem:[#allocation3 + $0x28] sm:$0xff] }
 0xd80   :  { %1289 = vst.msk [vmem:[#allocation3 + $0x38] sm:$0xff] %vm183_vm4, %v1287_v21  ;;  %v1381_v48 = vpack.c.bf16 %v1367_v60, %v1366_v27 }
 0xd87   :  { %v1369_v1 = vld [vmem:[#allocation3 + $0x38] sm:$0xff] }
 0xd88   :  { %v1382_v49 = vpack.c.bf16 %v1369_v1, %v1368_v43 }
 0xd8a   :  { %1675 = vmatmul.msk.bf16.gmra.mxu3 %vm183_vm4, %v1381_v48 }
 0xd9a   :  { %1676 = vmatmul.msk.bf16.gmra.mxu3 %vm183_vm4, %v1382_v49 }
 0xd9c   :  { %v1416_v55 = vpop.f32.mrf.mxu3 }
 0xd9d   :  { %v1417_v42 = vadd.f32 %v2596_v26, %v1416_v55 }
 0xd9f   :  { %v1440_v45 = vmax.f32 %v1417_v42, 0.0 }
 0xda4   :  { %v1418_v52 = vpop.f32.mrf.mxu3 }
 0xda5   :  { %v1419_v31 = vadd.f32 %v2596_v26, %v1418_v52  ;;  %v2639_v52 = vld [vmem:[%s2710_s18] ss:$0 sm:$0xff] }
 0xda7   :  { %v1441_v2 = vmax.f32 %v1419_v31, 0.0 }
 0xda9   :  { %v1457_v38 = vpack.c.bf16 %v1441_v2, %v1440_v45 }
 0xdab   :  { %1678 = vmatmul.msk.bf16.vlgmr.msrb.gmra.mxu1 %vm183_vm4, %v1457_v38 }
 0xde5   :  { %v1321_v40 = vpop.f32.mrf.mxu0 }
 0xde6   :  { %v1345_v10 = vadd.f32 %v2397_v23, %v1321_v40  ;;  %v1291_v23 = vld [vmem:[#allocation2 + $0x88] sm:$0xff] }
 0xdeb   :  { %v1308_v41 = vpop.f32.mrf.mxu2 }
 0xdec   :  { %v1325_v0 = vadd.f32 %v1308_v41, %v2369_v12  ;;  %v1533_v12 = vld [vmem:[%s2711_s19 + $0x30] sm:$0xff] }
 0xded   :  { %v1323_v36 = vpop.f32.mrf.mxu0  ;;  %v1543_v37 = vpack.c.bf16 %v1534_v47, %v1533_v12 }
 0xdee   :  { %v1672_v29 = vmul.f32 -1.442695, %v1325_v0 }
 0xdef   :  { %1567 = vmatpush.bf16.msrb.mxu2 %v1543_v37 }
 0xdf0   :  { %1755 = vpow2.f32 %v1672_v29 }
 0xdf3   :  { %v1310_v20 = vpop.f32.mrf.mxu2  ;;  %1568 = vmatpush.bf16.msrb.mxu2 %v1542_v63 }
 0xdf6   :  { %v1756_v54 = vpop.eup %1755 }
 0xdf7   :  { %v1329_v59 = vadd.f32 1.0, %v1756_v54  ;;  %1569 = vmatpush.bf16.msrb.mxu2 %v1541_v35 }
 0xdf9   :  { %1757 = vrcp.f32 %v1329_v59  ;;  %v1341_v17 = vand.u32 2147483648, %v1329_v59  ;;  %v1339_v32 = vand.u32 2147483647, %v1329_v59  ;;  %vm1335_vm8 = vweird.f32 %v1329_v59 }
 0xdfb   :  { %v1342_v58 = vor.u32 1.1754944e-38, %v1341_v17  ;;  %vm1340_vm10 = vcmp.eq.f32.partialorder %v1339_v32, 8.507059e+37  ;;  %1570 = vmatpush.bf16.msrb.mxu2 %v1540_v30 }
 0xdfd   :  { %v1421_v28 = vpop.f32.mrf.mxu3 }
 0xdfe   :  { %v1422_v61 = vadd.f32 %v2596_v26, %v1421_v28 }
 0xdff   :  { %v1758_v57 = vpop.eup %1757 }
 0xe00   :  { %v1331_v51 = vmul.f32 %v1758_v57, %v1329_v59  ;;  %vm1336_vm7 = vweird.f32 %v1758_v57  ;;  %v1442_v6 = vmax.f32 %v1422_v61, 0.0 }
 0xe01   :  { %vm1337_vm9 = vmor %vm1335_vm8, %vm1336_vm7 }
 0xe02   :  { %v1332_v5 = vsub.f32 1.0, %v1331_v51 }
 0xe04   :  { %v1333_v4 = vmul.f32 %v1758_v57, %v1332_v5 }
 0xe05   :  { %v1423_v18 = vpop.f32.mrf.mxu3 }
 0xe06   :  { %v1334_v39 = vadd.f32 %v1758_v57, %v1333_v4  ;;  %v1424_v25 = vadd.f32 %v2596_v26, %v1423_v18 }
 0xe08   :  { %v1338_v3 = vsel %vm1337_vm9, %v1758_v57, %v1334_v39  ;;  %v1443_v62 = vmax.f32 %v1424_v25, 0.0 }
 0xe09   :  { %v1343_v34 = vsel %vm1340_vm10, %v1342_v58, %v1338_v3 }
 0xe0a   :  { %v1458_v13 = vpack.c.bf16 %v1443_v62, %v1442_v6  ;;  %v1346_v53 = vmul.f32 %v1345_v10, %v1343_v34  ;;  %v1349_v0 = vsub.f32 1.0, %v1343_v34  ;;  %v1355_v29 = vmul.f32 %v1343_v34, %v2546_v44  ;;  %v1706_v34 = vld [vmem:[%s2712_s20] ss:$0 sm:$0xff] }
 0xe0c   :  { %1679 = vmatmul.msk.bf16.gmra.mxu1 %vm183_vm4, %v1458_v13  ;;  %v1347_v11 = vadd.f32 %v1346_v53, %v1291_v23 }
 0xe0d   :  { %v1426_v24 = vpop.f32.mrf.mxu3 }
 0xe0e   :  { %1759 = vtanh.f32 %v1347_v11  ;;  %v1427_v19 = vadd.f32 %v2596_v26, %v1426_v24 }
 0xe10   :  { %v1444_v60 = vmax.f32 %v1427_v19, 0.0 }
 0xe14   :  { %v1760_v21 = vpop.eup %1759 }
 0xe15   :  { %v1428_v46 = vpop.f32.mrf.mxu3  ;;  %1351 = vrot.lane.b32.xlu0 %v1760_v21, %s1762_s14 }
 0xe16   :  { %v1429_v22 = vadd.f32 %v2596_v26, %v1428_v46 }
 0xe18   :  { %v1445_v8 = vmax.f32 %v1429_v22, 0.0 }
 0xe1a   :  { %v1459_v50 = vpack.c.bf16 %v1445_v8, %v1444_v60 }
 0xe1c   :  { %1680 = vmatmul.msk.bf16.gmra.mxu1 %vm183_vm4, %v1459_v50 }
 0xe1d   :  { %v1431_v56 = vpop.f32.mrf.mxu3 }
 0xe1e   :  { %v1432_v27 = vadd.f32 %v2596_v26, %v1431_v56 }
 0xe20   :  { %v1446_v43 = vmax.f32 %v1432_v27, 0.0 }
 0xe25   :  { %v1433_v48 = vpop.f32.mrf.mxu3 }
 0xe26   :  { %v1434_v1 = vadd.f32 %v2596_v26, %v1433_v48 }
 0xe28   :  { %v1447_v49 = vmax.f32 %v1434_v1, 0.0  ;;  %v1494_v55 = vpop.f32.mrf.mxu1 }
 0xe29   :  { %v1495_v31 = vadd.f32 %v2639_v52, %v1494_v55 }
 0xe2a   :  { %v1460_v42 = vpack.c.bf16 %v1447_v49, %v1446_v43 }
 0xe2b   :  { %v1518_v38 = vmax.f32 %v1495_v31, 0.0 }
 0xe2c   :  { %1681 = vmatmul.msk.bf16.gmra.mxu1 %vm183_vm4, %v1460_v42 }
 0xe30   :  { %v1496_v45 = vpop.f32.mrf.mxu1 }
 0xe31   :  { %v1497_v2 = vadd.f32 %v2639_v52, %v1496_v45 }
 0xe33   :  { %v1519_v40 = vmax.f32 %v1497_v2, 0.0 }
 0xe35   :  { %v1535_v41 = vpack.c.bf16 %v1519_v40, %v1518_v38 }
 0xe37   :  { %1683 = vmatmul.msk.bf16.vlgmr.msrb.gmra.mxu2 %vm183_vm4, %v1535_v41 }
 0xe87   :  { %v1352_v36 = vpop.permute.xlu0 %1351 }
 0xe88   :  { %v1354_v20 = vmul.f32 %v1352_v36, %v1349_v0 }
 0xe89   :  { %v1499_v54 = vpop.f32.mrf.mxu1 }
 0xe8a   :  { %v1356_v59 = vadd.f32 %v1355_v29, %v1354_v20  ;;  %v1500_v28 = vadd.f32 %v2639_v52, %v1499_v54 }
 0xe8c   :  { %1358 = vrot.lane.b32.xlu0 %v1356_v59, %s1762_s14  ;;  %v1520_v5 = vmax.f32 %v1500_v28, 0.0 }
 0xe91   :  { %v1501_v57 = vpop.f32.mrf.mxu1 }
 0xe92   :  { %v1502_v51 = vadd.f32 %v2639_v52, %v1501_v57 }
 0xe94   :  { %v1521_v17 = vmax.f32 %v1502_v51, 0.0 }
 0xe96   :  { %v1536_v4 = vpack.c.bf16 %v1521_v17, %v1520_v5 }
 0xe98   :  { %1684 = vmatmul.msk.bf16.gmra.mxu2 %vm183_vm4, %v1536_v4 }
 0xe99   :  { %v1504_v32 = vpop.f32.mrf.mxu1 }
 0xe9a   :  { %v1505_v61 = vadd.f32 %v2639_v52, %v1504_v32 }
 0xe9c   :  { %v1522_v12 = vmax.f32 %v1505_v61, 0.0 }
 0xea1   :  { %v1506_v18 = vpop.f32.mrf.mxu1 }
 0xea2   :  { %v1507_v44 = vadd.f32 %v2639_v52, %v1506_v18 }
 0xea4   :  { %v1523_v47 = vmax.f32 %v1507_v44, 0.0 }
 0xea6   :  { %v1537_v39 = vpack.c.bf16 %v1523_v47, %v1522_v12 }
 0xea8   :  { %1685 = vmatmul.msk.bf16.gmra.mxu2 %vm183_vm4, %v1537_v39 }
 0xea9   :  { %v1509_v25 = vpop.f32.mrf.mxu1 }
 0xeaa   :  { %v1510_v37 = vadd.f32 %v2639_v52, %v1509_v25 }
 0xeac   :  { %v1524_v3 = vmax.f32 %v1510_v37, 0.0 }
 0xeb1   :  { %v1511_v10 = vpop.f32.mrf.mxu1 }
 0xeb2   :  { %v1512_v58 = vadd.f32 %v2639_v52, %v1511_v10 }
 0xeb4   :  { %v1525_v6 = vmax.f32 %v1512_v58, 0.0 }
 0xeb6   :  { %v1538_v62 = vpack.c.bf16 %v1525_v6, %v1524_v3 }
 0xeb8   :  { %1686 = vmatmul.msk.bf16.gmra.mxu2 %vm183_vm4, %v1538_v62 }
 0xeba   :  { %v1572_v33 = vpop.f32.mrf.mxu2 }
 0xebb   :  { %v1573_v7 = vadd.f32 %v1706_v34, %v1572_v33 }
 0xebd   :  { %1596 = vst [vmem:[%s2713_s21] sm:$0xff] %v1573_v7 }
 0xec2   :  { %v1574_v13 = vpop.f32.mrf.mxu2 }
 0xec3   :  { %v1575_v53 = vadd.f32 %v1706_v34, %v1574_v13 }
 0xec5   :  { %1597 = vst [vmem:[%s2713_s21 + $0x8] sm:$0xff] %v1575_v53 }
 0xefe   :  { %v1359_v63 = vpop.permute.xlu0 %1358 }
 0xeff   :  { %1361 = vst.msk [vmem:[#allocation3 + $0x40] sm:$0xff] %vm183_vm4, %v1359_v63 }
 0xf06   :  { %v1370_v23 = vld [vmem:[#allocation3 + $0x40] sm:$0xff] }
 0xf07   :  { %v1383_v11 = vpack.c.bf16 %v1370_v23, %v1370_v23 }
 0xf09   :  { %1677 = vmatmul.msk.bf16.gmra.mxu3 %vm183_vm4, %v1383_v11 }
 0xf1b   :  { %v1577_v24 = vpop.f32.mrf.mxu2 }
 0xf1c   :  { %v1578_v16 = vadd.f32 %v1706_v34, %v1577_v24 }
 0xf1e   :  { %1598 = vst [vmem:[%s2713_s21 + $0x10] sm:$0xff] %v1578_v16 }
 0xf23   :  { %v1579_v14 = vpop.f32.mrf.mxu2 }
 0xf24   :  { %v1580_v35 = vadd.f32 %v1706_v34, %v1579_v14 }
 0xf26   :  { %1599 = vst [vmem:[%s2713_s21 + $0x18] sm:$0xff] %v1580_v35 }
 0xf2b   :  { %v1582_v9 = vpop.f32.mrf.mxu2 }
 0xf2c   :  { %v1583_v15 = vadd.f32 %v1706_v34, %v1582_v9 }
 0xf2e   :  { %1600 = vst [vmem:[%s2713_s21 + $0x20] sm:$0xff] %v1583_v15 }
 0xf33   :  { %v1584_v30 = vpop.f32.mrf.mxu2 }
 0xf34   :  { %v1585_v21 = vadd.f32 %v1706_v34, %v1584_v30 }
 0xf36   :  { %1601 = vst [vmem:[%s2713_s21 + $0x28] sm:$0xff] %v1585_v21 }
 0xf3b   :  { %v1587_v19 = vpop.f32.mrf.mxu2 }
 0xf3c   :  { %v1588_v46 = vadd.f32 %v1706_v34, %v1587_v19 }
 0xf3e   :  { %1602 = vst [vmem:[%s2713_s21 + $0x30] sm:$0xff] %v1588_v46 }
 0xf43   :  { %v1589_v22 = vpop.f32.mrf.mxu2 }
 0xf44   :  { %v1590_v60 = vadd.f32 %v1706_v34, %v1589_v22 }
 0xf46   :  { %1603 = vst [vmem:[%s2713_s21 + $0x38] sm:$0xff] %v1590_v60 }
 0xf8c   :  { %v1436_v8 = vpop.f32.mrf.mxu3 }
 0xf8d   :  { %v1437_v50 = vadd.f32 %v2596_v26, %v1436_v8 }
 0xf8f   :  { %v1448_v56 = vmax.f32 %v1437_v50, 0.0 }
 0xf91   :  { %v1461_v27 = vpack.c.bf16 %v1448_v56, %v1448_v56 }
 0xf93   :  { %1682 = vmatmul.msk.bf16.gmra.mxu1 %vm183_vm4, %v1461_v27 }
 0xf94   :  { %v1438_v48 = vpop.f32.mrf.mxu3 }
0x1010   :  { %v1514_v1 = vpop.f32.mrf.mxu1 }
0x1011   :  { %v1515_v43 = vadd.f32 %v2639_v52, %v1514_v1 }
0x1013   :  { %v1526_v49 = vmax.f32 %v1515_v43, 0.0 }
0x1015   :  { %v1539_v55 = vpack.c.bf16 %v1526_v49, %v1526_v49 }
0x1017   :  { %1687 = vmatmul.msk.bf16.gmra.mxu2 %vm183_vm4, %v1539_v55 }
0x1018   :  { %v1516_v42 = vpop.f32.mrf.mxu1 }
0x109a   :  { %v1592_v31 = vpop.f32.mrf.mxu2 }
0x109b   :  { %v1593_v45 = vadd.f32 %v1706_v34, %v1592_v31 }
0x109d   :  { %1604 = vst [vmem:[%s2713_s21 + $0x40] sm:$0xff] %v1593_v45 }
0x10a2   :  { %v1594_v26 = vpop.f32.mrf.mxu2 }

</bundles_post_ra>
